<compile_context>
chip_gen: v7x
topology: tpu7x:2x2x1
jax: 0.10.0
libtpu: 0.0.40
codegen_flags: <defaults>
</compile_context>

<pallas_src>
import functools

import jax
import jax.numpy as jnp
from jax.experimental import pallas as pl
from jax.experimental.pallas import tpu as pltpu

NODE_PAD = 512   # node-count padding base; must be tile-aligned with tm/tk
LANE = 128


def _round_up(x, m):
    return ((x + m - 1) // m) * m


# ----------------------------------------------------------------------------
# Fused epilogue: optional ReLU, optional masked log_softmax over real cols.
# Always executed on the f32 accumulator (so the -1e30 fill cannot overflow).
# ----------------------------------------------------------------------------
def _epilogue(h, cout, coutp, apply_relu, apply_log_softmax):
    if apply_relu:
        h = jnp.maximum(h, 0.0)
    if apply_log_softmax:
        if cout < coutp:
            col = jax.lax.broadcasted_iota(jnp.int32, h.shape, 1)
            h = jnp.where(col < cout, h, -1e30)  # padded lanes drop out
        m = jnp.max(h, axis=-1, keepdims=True)
        s = h - m
        lse = jnp.log(jnp.sum(jnp.exp(s), axis=-1, keepdims=True))
        h = s - lse
    return h


# ----------------------------------------------------------------------------
# Small matmul kernel: XW = X @ W_l, hoisted out of the main grid for the
# project-first path (computed once instead of once per target-row tile).
# ----------------------------------------------------------------------------
def _project_kernel(x_ref, w_ref, o_ref):
    o_ref[...] = jnp.dot(x_ref[...], w_ref[...],
                         preferred_element_type=jnp.float32).astype(o_ref.dtype)


def _project(x_p, w_p, *, out_dtype, tm=512):
    n, cinp = x_p.shape
    coutp = w_p.shape[1]
    tm = min(tm, n)
    assert n % tm == 0
    return pl.pallas_call(
        _project_kernel,
        out_shape=jax.ShapeDtypeStruct((n, coutp), out_dtype),
        grid_spec=pltpu.PrefetchScalarGridSpec(
            num_scalar_prefetch=0,
            grid=(n // tm,),
            in_specs=[pl.BlockSpec((tm, cinp), lambda i: (i, 0)),
                      pl.BlockSpec((cinp, coutp), lambda i: (0, 0))],
            out_specs=pl.BlockSpec((tm, coutp), lambda i: (i, 0))),
        compiler_params=pltpu.CompilerParams(
            dimension_semantics=("parallel",),
            vmem_limit_bytes=32 * 1024 * 1024),
    )(x_p, w_p)


# ----------------------------------------------------------------------------
# Main kernel: one SAGEConv layer, tiled over (target rows i, source tiles k).
# ----------------------------------------------------------------------------
def _sage_conv_kernel(a_ref, xs_ref, xt_ref, wl_ref, wr_ref, b_ref, o_ref,
                      acc_ref, ax_ref=None, *, project_first, cout, coutp,
                      apply_relu, apply_log_softmax):
    k = pl.program_id(1)

    @pl.when(k == 0)
    def _init():
        # Root term + bias; overlaps the first A-tile DMA.
        acc_ref[...] = (jnp.dot(xt_ref[...], wr_ref[...],
                                preferred_element_type=jnp.float32)
                        + b_ref[...])
        if not project_first:
            ax_ref[...] = jnp.zeros_like(ax_ref)

    if project_first:
        # xs already holds X @ W_l (width coutp): accumulate straight into acc.
        acc_ref[...] += jnp.dot(a_ref[...], xs_ref[...],
                                preferred_element_type=jnp.float32)
    else:
        # Accumulate the mean aggregation A @ X (width cinp).
        ax_ref[...] += jnp.dot(a_ref[...], xs_ref[...],
                               preferred_element_type=jnp.float32)

    @pl.when(k == pl.num_programs(1) - 1)
    def _finalize():
        h = acc_ref[...]
        if not project_first:
            h = h + jnp.dot(ax_ref[...].astype(wl_ref.dtype), wl_ref[...],
                            preferred_element_type=jnp.float32)
        o_ref[...] = _epilogue(h, cout, coutp, apply_relu,
                               apply_log_softmax).astype(o_ref.dtype)


def sage_conv_layer(A_p, x_p, w_l, b_l, w_r, *, apply_relu, apply_log_softmax,
                    project_first=None, tm=512, tk=512,
                    compute_dtype=jnp.bfloat16, out_dtype=None):
    """One SAGEConv((x, x[:n_target]), edge_index) layer on PRE-PADDED inputs.

    A_p : (nt_p, ns_p) row-normalized mean adjacency in compute_dtype; zero in
          padded rows/cols (so padded / garbage source rows contribute nothing).
    x_p : (ns_p, cinp) source features in compute_dtype, cinp a multiple of
          128, padded lanes zero.  The target features x[:n_target] are read
          from x_p via the row-tile BlockSpec (nt_p <= ns_p) -- no slice/copy.
    Returns the full padded (nt_p, coutp) output (hidden: compute_dtype,
    log_softmax layer: f32).  The real region is [:n_target, :cout].
    """
    nt_p, ns_p = A_p.shape
    assert x_p.shape[0] == ns_p and nt_p <= ns_p
    cinp = x_p.shape[1]
    assert cinp % LANE == 0
    cin, cout = w_l.shape
    coutp = _round_up(cout, LANE)
    if out_dtype is None:
        out_dtype = jnp.float32 if apply_log_softmax else compute_dtype
    if project_first is None:
        # Stream X@W_l (width coutp) instead of X (width cinp) when narrower.
        project_first = coutp < cinp

    # Weights / bias are tiny: pad + cast here (never the big A / X streams).
    f32 = jnp.float32
    wl_p = jnp.pad(w_l.astype(f32),
                   ((0, cinp - cin), (0, coutp - cout))).astype(compute_dtype)
    wr_p = jnp.pad(w_r.astype(f32),
                   ((0, cinp - cin), (0, coutp - cout))).astype(compute_dtype)
    b_p = jnp.pad(b_l.astype(f32), (0, coutp - cout)).reshape(1, coutp)

    tm = min(tm, nt_p)
    tk = min(tk, ns_p)
    assert nt_p % tm == 0 and ns_p % tk == 0, "node padding must be tile-aligned"

    if project_first:
        xs = _project(x_p, wl_p, out_dtype=compute_dtype)   # (ns_p, coutp)
        xs_width = coutp
    else:
        xs = x_p
        xs_width = cinp

    grid = (nt_p // tm, ns_p // tk)
    scratch = [pltpu.VMEM((tm, coutp), jnp.float32)]         # acc (root + out)
    if not project_first:
        scratch.append(pltpu.VMEM((tm, cinp), jnp.float32))  # A @ X accumulator

    kernel = functools.partial(
        _sage_conv_kernel, project_first=project_first, cout=cout, coutp=coutp,
        apply_relu=apply_relu, apply_log_softmax=apply_log_softmax)

    out = pl.pallas_call(
        kernel,
        out_shape=jax.ShapeDtypeStruct((nt_p, coutp), out_dtype),
        grid_spec=pltpu.PrefetchScalarGridSpec(
            num_scalar_prefetch=0,
            grid=grid,
            in_specs=[
                pl.BlockSpec((tm, tk), lambda i, k: (i, k)),        # A
                pl.BlockSpec((tk, xs_width), lambda i, k: (k, 0)),  # X or X@W_l
                pl.BlockSpec((tm, cinp), lambda i, k: (i, 0)),      # x_target rows
                pl.BlockSpec((cinp, coutp), lambda i, k: (0, 0)),   # W_l (unused if project_first)
                pl.BlockSpec((cinp, coutp), lambda i, k: (0, 0)),   # W_r
                pl.BlockSpec((1, coutp), lambda i, k: (0, 0)),      # bias (f32)
            ],
            out_specs=pl.BlockSpec((tm, coutp), lambda i, k: (i, 0)),
            scratch_shapes=scratch),
        compiler_params=pltpu.CompilerParams(
            dimension_semantics=("parallel", "arbitrary"),
            vmem_limit_bytes=32 * 1024 * 1024),
    )(A_p, xs, x_p, wl_p, wr_p, b_p)
    return out


# ----------------------------------------------------------------------------
# Glue: dense, PADDED, row-normalized adjacency from a sparse edge_index.
# Built once per layer (outside the kernel call); padded rows/cols are zero.
# ----------------------------------------------------------------------------
def dense_mean_adjacency(edge_index, n_source, n_target, *, node_pad=NODE_PAD):
    """(A @ X)[i] == mean of X[src] over edges into i; zero rows for isolated
    targets (matches PyG SAGEConv mean aggregation).  Returns f32 padded to
    (round_up(n_target), round_up(n_source)); cast to bf16 once outside."""
    nt_p = _round_up(n_target, node_pad)
    ns_p = _round_up(n_source, node_pad)
    src, dst = edge_index[0], edge_index[1]
    counts = jnp.zeros((nt_p, ns_p), jnp.float32).at[dst, src].add(1.0)
    deg = counts.sum(axis=1, keepdims=True)
    return counts / jnp.maximum(deg, 1.0)


# ----------------------------------------------------------------------------
# SAGE model (eval-mode forward matching the PyTorch module semantics).
# ----------------------------------------------------------------------------
def init_sage_params(key, in_channels, hidden_channels, out_channels, num_layers):
    dims = [in_channels] + [hidden_channels] * (num_layers - 1) + [out_channels]
    params = []
    for i in range(num_layers):
        cin, cout = dims[i], dims[i + 1]
        key, k1, k2, k3 = jax.random.split(key, 4)
        scale = 1.0 / jnp.sqrt(cin)
        w_l = jax.random.uniform(k1, (cin, cout), jnp.float32, -scale, scale)
        b_l = jax.random.uniform(k2, (cout,), jnp.float32, -scale, scale)
        w_r = jax.random.uniform(k3, (cin, cout), jnp.float32, -scale, scale)
        params.append((w_l, b_l, w_r))
    return params


def sage_forward(x, adjs, params, *, compute_dtype=jnp.bfloat16):
    """adjs: list of (A_padded [nt_p, ns_p] in compute_dtype, n_target).
    Mirrors (eval mode, dropout = identity):
        for i, (edge_index, _, size) in enumerate(adjs):
            x_target = x[:size[1]]
            x = conv_i((x, x_target), edge_index)
            if i != num_layers - 1: x = relu(x); x = dropout(x)
        return x.log_softmax(dim=-1)
    Activations stay padded between layers; sliced to the real shape once.
    """
    num_layers = len(params)
    # Pad + cast the input activation exactly once.
    ns_p0 = adjs[0][0].shape[1]
    cin0 = x.shape[1]
    cinp0 = _round_up(cin0, LANE)
    x_p = jnp.pad(x.astype(jnp.float32),
                  ((0, ns_p0 - x.shape[0]), (0, cinp0 - cin0))).astype(compute_dtype)

    n_target = x.shape[0]
    for i, (A_p, nt) in enumerate(adjs):
        w_l, b_l, w_r = params[i]
        last = i == num_layers - 1
        x_p = sage_conv_layer(A_p, x_p, w_l, b_l, w_r,
                              apply_relu=not last, apply_log_softmax=last,
                              compute_dtype=compute_dtype)
        n_target = nt
        # F.dropout(p=0.5, training=False) -> identity in eval mode.

    out_channels = params[-1][0].shape[1]
    return x_p[:n_target, :out_channels]   # single final slice


def reference_forward(x, adjs, params):
    """Pure-JAX reference on UNPADDED operands (for correctness checks)."""
    num_layers = len(params)
    for i, (A, n_target) in enumerate(adjs):
        w_l, b_l, w_r = params[i]
        h = (A @ x) @ w_l + b_l + x[:n_target] @ w_r
        if i != num_layers - 1:
            h = jnp.maximum(h, 0.0)
        x = h
    return jax.nn.log_softmax(x, axis=-1)


# ----------------------------------------------------------------------------
if __name__ == "__main__":
    key = jax.random.PRNGKey(0)

    in_channels, hidden_channels, out_channels = 32, 64, 16
    num_layers = 3
    # NeighborSampler-style shrinking node sets: layer i maps N[i] -> N[i+1]
    node_counts = [64, 48, 32, 16]

    key, kx = jax.random.split(key)
    x = jax.random.normal(kx, (node_counts[0], in_channels), jnp.float32)

    params = init_sage_params(key, in_channels, hidden_channels,
                              out_channels, num_layers)

    # Build synthetic bipartite edge_index per layer; densify + pad ONCE (glue).
    adjs_f32, adjs_bf16, adjs_real = [], [], []
    for i in range(num_layers):
        ns, nt = node_counts[i], node_counts[i + 1]
        n_edges = 4 * nt
        key, ks, kd = jax.random.split(key, 3)
        src = jax.random.randint(ks, (n_edges,), 0, ns)
        dst = jax.random.randint(kd, (n_edges,), 0, nt)
        edge_index = jnp.stack([src, dst], axis=0)
        A_pad = dense_mean_adjacency(edge_index, ns, nt)      # f32, padded once
        adjs_f32.append((A_pad, nt))
        adjs_bf16.append((A_pad.astype(jnp.bfloat16), nt))
        adjs_real.append((A_pad[:nt, :ns], nt))

    # Pure-JAX reference on unpadded operands.
    ref = reference_forward(x, adjs_real, params)

    # f32 Pallas path: tight check against the reference.
    out_f32 = jax.block_until_ready(
        sage_forward(x, adjs_f32, params, compute_dtype=jnp.float32))
    assert out_f32.shape == (node_counts[-1], out_channels)
    assert jnp.allclose(out_f32, ref, atol=1e-3, rtol=1e-3)

    # Default bf16 path (halves the dominant A / X HBM streams, f32 accumulate).
    out_bf16 = jax.block_until_ready(sage_forward(x, adjs_bf16, params))
    assert out_bf16.shape == (node_counts[-1], out_channels)
    assert jnp.allclose(jnp.sum(jnp.exp(out_bf16), axis=-1), 1.0, atol=1e-3)
    assert float(jnp.max(jnp.abs(out_bf16 - ref))) < 0.3

    # Exercise the project-first (hoisted A @ (X @ W_l)) path on layer 0, f32.
    A0_p, nt0 = adjs_f32[0]
    cin0p = _round_up(in_channels, LANE)
    x_p0 = jnp.pad(x, ((0, A0_p.shape[1] - x.shape[0]),
                       (0, cin0p - in_channels)))
    w_l0, b_l0, w_r0 = params[0]
    out0_p = sage_conv_layer(A0_p, x_p0, w_l0, b_l0, w_r0,
                             apply_relu=True, apply_log_softmax=False,
                             project_first=True, compute_dtype=jnp.float32,
                             out_dtype=jnp.float32)
    out0 = out0_p[:nt0, :hidden_channels]
    A0_real = A0_p[:nt0, :node_counts[0]]
    ref0 = jnp.maximum((A0_real @ x) @ w_l0 + b_l0 + x[:nt0] @ w_r0, 0.0)
    assert jnp.allclose(out0, ref0, atol=1e-3, rtol=1e-3)

    print("KERNEL_OK")
</pallas_src>

<mosaic_0001>
module attributes {stable_mosaic.version = 11 : i64} {
  func.func @_sage_conv_kernel(%arg0: i32, %arg1: i32, %arg2: memref<512x512xf32, #tpu.memory_space<vmem>>, %arg3: memref<512x128xf32, #tpu.memory_space<vmem>>, %arg4: memref<512x128xf32, #tpu.memory_space<vmem>>, %arg5: memref<128x128xf32, #tpu.memory_space<vmem>>, %arg6: memref<128x128xf32, #tpu.memory_space<vmem>>, %arg7: memref<1x128xf32, #tpu.memory_space<vmem>>, %arg8: memref<512x128xf32, #tpu.memory_space<vmem>>, %arg9: memref<512x128xf32, #tpu.memory_space<vmem>>, %arg10: memref<512x128xf32, #tpu.memory_space<vmem>>) attributes {dimension_semantics = [#tpu.dimension_semantics<parallel>, #tpu.dimension_semantics<arbitrary>], iteration_bounds = array<i64: 1, 1>, scalar_prefetch = 0 : i64, scratch_operands = 2 : i64, tpu.core_type = #tpu.core_type<tc>, window_params = [{transform_indices = @transform_0, window_bounds = array<i64: 512, 512>}, {transform_indices = @transform_1, window_bounds = array<i64: 512, 128>}, {transform_indices = @transform_2, window_bounds = array<i64: 512, 128>}, {pipeline_mode = #tpu.pipeline_mode<synchronous>, transform_indices = @transform_3, window_bounds = array<i64: 128, 128>}, {pipeline_mode = #tpu.pipeline_mode<synchronous>, transform_indices = @transform_4, window_bounds = array<i64: 128, 128>}, {pipeline_mode = #tpu.pipeline_mode<synchronous>, transform_indices = @transform_5, window_bounds = array<i64: 1, 128>}, {transform_indices = @transform_6, window_bounds = array<i64: 512, 128>}]} {
    %c0_i32 = arith.constant 0 : i32
    %0 = arith.cmpi eq, %arg1, %c0_i32 : i32
    %1 = arith.extui %0 : i1 to i32
    %c0_i32_0 = arith.constant 0 : i32
    %2 = arith.cmpi ne, %1, %c0_i32_0 : i32
    scf.if %2 {
      %c0_10 = arith.constant 0 : index
      %c0_11 = arith.constant 0 : index
      %12 = vector.load %arg4[%c0_10, %c0_11] : memref<512x128xf32, #tpu.memory_space<vmem>>, vector<512x128xf32>
      %c0_12 = arith.constant 0 : index
      %c0_13 = arith.constant 0 : index
      %13 = vector.load %arg6[%c0_12, %c0_13] : memref<128x128xf32, #tpu.memory_space<vmem>>, vector<128x128xf32>
      %cst_14 = arith.constant dense<0.000000e+00> : vector<512x128xf32>
      %14 = tpu.matmul %12, %13, %cst_14 {dimension_numbers = #tpu.dot_dimension_numbers<[1], [0], [0], [1], [0, 0, 1, 1], [], []>} : vector<512x128xf32>, vector<128x128xf32>, vector<512x128xf32> -> vector<512x128xf32>
      %c0_15 = arith.constant 0 : index
      %c0_16 = arith.constant 0 : index
      %15 = vector.load %arg7[%c0_15, %c0_16] : memref<1x128xf32, #tpu.memory_space<vmem>>, vector<1x128xf32>
      %16 = vector.broadcast %15 : vector<1x128xf32> to vector<512x128xf32>
      %17 = arith.addf %14, %16 : vector<512x128xf32>
      %c0_17 = arith.constant 0 : index
      %c0_18 = arith.constant 0 : index
      %18 = vector.load %arg9[%c0_17, %c0_18] : memref<512x128xf32, #tpu.memory_space<vmem>>, vector<512x128xf32>
      tpu.vector_store %arg9[%c0_17, %c0_18], %17 {strides = array<i32>} : memref<512x128xf32, #tpu.memory_space<vmem>>, vector<512x128xf32>,
      %cst_19 = arith.constant 0.000000e+00 : f32
      %19 = vector.broadcast %cst_19 : f32 to vector<512x128xf32>
      %c0_20 = arith.constant 0 : index
      %c0_21 = arith.constant 0 : index
      %20 = vector.load %arg10[%c0_20, %c0_21] : memref<512x128xf32, #tpu.memory_space<vmem>>, vector<512x128xf32>
      tpu.vector_store %arg10[%c0_20, %c0_21], %19 {strides = array<i32>} : memref<512x128xf32, #tpu.memory_space<vmem>>, vector<512x128xf32>,
    } else {
    }
    %c0 = arith.constant 0 : index
    %c0_1 = arith.constant 0 : index
    %3 = vector.load %arg10[%c0, %c0_1] : memref<512x128xf32, #tpu.memory_space<vmem>>, vector<512x128xf32>
    %c0_2 = arith.constant 0 : index
    %c0_3 = arith.constant 0 : index
    %4 = vector.load %arg2[%c0_2, %c0_3] : memref<512x512xf32, #tpu.memory_space<vmem>>, vector<512x512xf32>
    %c0_4 = arith.constant 0 : index
    %c0_5 = arith.constant 0 : index
    %5 = vector.load %arg3[%c0_4, %c0_5] : memref<512x128xf32, #tpu.memory_space<vmem>>, vector<512x128xf32>
    %cst = arith.constant dense<0.000000e+00> : vector<512x128xf32>
    %6 = tpu.matmul %4, %5, %cst {dimension_numbers = #tpu.dot_dimension_numbers<[1], [0], [0], [1], [0, 0, 1, 1], [], []>} : vector<512x512xf32>, vector<512x128xf32>, vector<512x128xf32> -> vector<512x128xf32>
    %7 = arith.addf %3, %6 : vector<512x128xf32>
    %c0_6 = arith.constant 0 : index
    %c0_7 = arith.constant 0 : index
    %8 = vector.load %arg10[%c0_6, %c0_7] : memref<512x128xf32, #tpu.memory_space<vmem>>, vector<512x128xf32>
    tpu.vector_store %arg10[%c0_6, %c0_7], %7 {strides = array<i32>} : memref<512x128xf32, #tpu.memory_space<vmem>>, vector<512x128xf32>,
    %c0_i32_8 = arith.constant 0 : i32
    %9 = arith.cmpi eq, %arg1, %c0_i32_8 : i32
    %10 = arith.extui %9 : i1 to i32
    %c0_i32_9 = arith.constant 0 : i32
    %11 = arith.cmpi ne, %10, %c0_i32_9 : i32
    scf.if %11 {
      %c0_10 = arith.constant 0 : index
      %c0_11 = arith.constant 0 : index
      %12 = vector.load %arg9[%c0_10, %c0_11] : memref<512x128xf32, #tpu.memory_space<vmem>>, vector<512x128xf32>
      %c0_12 = arith.constant 0 : index
      %c0_13 = arith.constant 0 : index
      %13 = vector.load %arg10[%c0_12, %c0_13] : memref<512x128xf32, #tpu.memory_space<vmem>>, vector<512x128xf32>
      %c0_14 = arith.constant 0 : index
      %c0_15 = arith.constant 0 : index
      %14 = vector.load %arg5[%c0_14, %c0_15] : memref<128x128xf32, #tpu.memory_space<vmem>>, vector<128x128xf32>
      %cst_16 = arith.constant dense<0.000000e+00> : vector<512x128xf32>
      %15 = tpu.matmul %13, %14, %cst_16 {dimension_numbers = #tpu.dot_dimension_numbers<[1], [0], [0], [1], [0, 0, 1, 1], [], []>} : vector<512x128xf32>, vector<128x128xf32>, vector<512x128xf32> -> vector<512x128xf32>
      %16 = arith.addf %12, %15 : vector<512x128xf32>
      %cst_17 = arith.constant 0.000000e+00 : f32
      %17 = vector.broadcast %cst_17 : f32 to vector<512x128xf32>
      %18 = arith.maximumf %16, %17 : vector<512x128xf32>
      %c0_18 = arith.constant 0 : index
      %c0_19 = arith.constant 0 : index
      %19 = vector.load %arg8[%c0_18, %c0_19] : memref<512x128xf32, #tpu.memory_space<vmem>>, vector<512x128xf32>
      tpu.vector_store %arg8[%c0_18, %c0_19], %18 {strides = array<i32>} : memref<512x128xf32, #tpu.memory_space<vmem>>, vector<512x128xf32>,
    } else {
    }
    return
  }
  func.func @transform_0(%arg0: i32, %arg1: i32) -> (i32, i32) {
    %c0_i32 = arith.constant 0 : i32
    return %arg0, %arg1 : i32, i32
  }
  func.func @transform_1(%arg0: i32, %arg1: i32) -> (i32, i32) {
    %c0_i32 = arith.constant 0 : i32
    %c0_i32_0 = arith.constant 0 : i32
    return %arg1, %c0_i32 : i32, i32
  }
  func.func @transform_2(%arg0: i32, %arg1: i32) -> (i32, i32) {
    %c0_i32 = arith.constant 0 : i32
    %c0_i32_0 = arith.constant 0 : i32
    return %arg0, %c0_i32 : i32, i32
  }
  func.func @transform_3(%arg0: i32, %arg1: i32) -> (i32, i32) {
    %c0_i32 = arith.constant 0 : i32
    %c0_i32_0 = arith.constant 0 : i32
    %c0_i32_1 = arith.constant 0 : i32
    return %c0_i32, %c0_i32_0 : i32, i32
  }
  func.func @transform_4(%arg0: i32, %arg1: i32) -> (i32, i32) {
    %c0_i32 = arith.constant 0 : i32
    %c0_i32_0 = arith.constant 0 : i32
    %c0_i32_1 = arith.constant 0 : i32
    return %c0_i32, %c0_i32_0 : i32, i32
  }
  func.func @transform_5(%arg0: i32, %arg1: i32) -> (i32, i32) {
    %c0_i32 = arith.constant 0 : i32
    %c0_i32_0 = arith.constant 0 : i32
    %c0_i32_1 = arith.constant 0 : i32
    return %c0_i32, %c0_i32_0 : i32, i32
  }
  func.func @transform_6(%arg0: i32, %arg1: i32) -> (i32, i32) {
    %c0_i32 = arith.constant 0 : i32
    %c0_i32_0 = arith.constant 0 : i32
    return %arg0, %c0_i32 : i32, i32
  }
}

</mosaic_0001>

<bundles_post_ra>
// kernel: tpu_custom_call.1
= control target key start
LH: loop header
LB: loop body
LE: loop exit
PB: predicated region body
PF: predicated region fallthrough
CT: control target
= control target key end

     0   :  { %11 = vsyncpa [#allocation5], 0  ;;  %s4015_s0 = inlined_call_operand.hbm [shape: f32[512,512], index: 0, kind: input, shape index: {}]   ;;  %s4016_s1 = inlined_call_operand.hbm [shape: f32[512,128], index: 1, kind: input, shape index: {}]   ;;  %s4017_s2 = inlined_call_operand.hbm [shape: f32[512,128], index: 2, kind: input, shape index: {}]   ;;  %s4018_s3 = inlined_call_operand.hbm [shape: f32[128,128], index: 3, kind: input, shape index: {}]   ;;  %s4019_s4 = inlined_call_operand.hbm [shape: f32[128,128], index: 4, kind: input, shape index: {}]   ;;  %s4020_s5 = inlined_call_operand.vmem [shape: f32[1,128], index: 5, kind: input, shape index: {}]   ;;  %s4021_s6 = inlined_call_operand.hbm [shape: f32[512,128], index: 6, kind: output, shape index: {}]  }
   0x1   :  { %12 = vsyncpa [#allocation8], 0 }
   0x2   :  { %13 = vsyncpa [#allocation11], 0 }
   0x3   :  { %14 = vsyncpa [#allocation6], 0  ;;  %s3701_s21 = smov [#allocation7]   ;;  %s3561_s25 = scalar_lea.hbm %s4016_s1, 8192 }
   0x4   :  { %s32_s22 = sshll.u32 %s3701_s21, 4  ;;  %p3562_p0 = scmp.ne.s32.totalorder %s4016_s1, %s3561_s25  ;;  %s33_s22 = int_to_ptr.vmem [resolvable:$true] %s32_s22 }
   0x5   :  { %p3565_p1 = scmp.lt.u32.totalorder %s3561_s25, %s4016_s1 }
   0x7   :  { %p3567_p2 = pnand %p3565_p1, %p3562_p0 }
   0x9   :  { %3570 = shalt.err (!%p3567_p2)
}
   0xa   :  { %s3571_s30 = scalar_lea.vmem %s33_s22, 8192  ;;  %p3576_p4 = scmp.lt.s32.totalorder %s33_s22, %s33_s22 }
   0xb   :  { %p3572_p3 = scmp.ne.s32.totalorder %s33_s22, %s3571_s30  ;;  %p3577_p5 = scmp.lt.s32.totalorder %s3571_s30, %s3571_s30 }
   0xd   :  { %p3578_p6 = por %p3577_p5, %p3576_p4 }
   0xf   :  { %p3579_p7 = pnand %p3578_p6, %p3572_p3 }
  0x11   :  { %3582 = shalt.err (!%p3579_p7)
}
  0x12   :  { %s3702_s7 = smov 128   ;;  %s3703_s8 = smov 8  }
  0x13   :  { %38 = dma.hbm_to_vmem [thread:$0]  %s4016_s1, 8192, %s33_s22, [#allocation8], %s3702_s7, %s3702_s7, %s3703_s8  }
  0x14   :  { %s3704_s11 = smov [#allocation10]   ;;  %s3705_s13 = smov [#allocation4]  }
  0x15   :  { %s56_s12 = sshll.u32 %s3704_s11, 4  ;;  %s20_s14 = sshll.u32 %s3705_s13, 4  ;;  %s57_s12 = int_to_ptr.vmem [resolvable:$true] %s56_s12  ;;  %s21_s14 = int_to_ptr.vmem [resolvable:$true] %s20_s14 }
  0x16   :  { %s3583_s17 = scalar_lea.hbm %s4018_s3, 2048 }
  0x17   :  { %p3584_p8 = scmp.ne.s32.totalorder %s4018_s3, %s3583_s17  ;;  %p3587_p9 = scmp.lt.u32.totalorder %s3583_s17, %s4018_s3 }
  0x19   :  { %p3589_p10 = pnand %p3587_p9, %p3584_p8 }
  0x1b   :  { %3592 = shalt.err (!%p3589_p10)
}
  0x1c   :  { %s3593_s1 = scalar_lea.vmem %s57_s12, 2048  ;;  %p3598_p12 = scmp.lt.s32.totalorder %s57_s12, %s57_s12 }
  0x1d   :  { %p3594_p11 = scmp.ne.s32.totalorder %s57_s12, %s3593_s1  ;;  %p3599_p13 = scmp.lt.s32.totalorder %s3593_s1, %s3593_s1 }
  0x1f   :  { %p3600_p0 = por %p3599_p13, %p3598_p12 }
  0x21   :  { %p3601_p1 = pnand %p3600_p0, %p3594_p11 }
  0x23   :  { %3604 = shalt.err (!%p3601_p1)
}
  0x24   :  { %62 = dma.hbm_to_vmem [thread:$0]  %s4018_s3, 2048, %s57_s12, [#allocation11], %s3702_s7, %s3702_s7, %s3703_s8  }
  0x25   :  { %s3605_s26 = scalar_lea.hbm %s4015_s0, 32768 }
  0x26   :  { %p3606_p2 = scmp.ne.s32.totalorder %s4015_s0, %s3605_s26  ;;  %p3609_p3 = scmp.lt.u32.totalorder %s3605_s26, %s4015_s0 }
  0x28   :  { %p3611_p4 = pnand %p3609_p3, %p3606_p2 }
  0x2a   :  { %3614 = shalt.err (!%p3611_p4)
}
  0x2b   :  { %s3615_s9 = scalar_lea.vmem %s21_s14, 32768  ;;  %p3620_p6 = scmp.lt.s32.totalorder %s21_s14, %s21_s14 }
  0x2c   :  { %p3616_p5 = scmp.ne.s32.totalorder %s21_s14, %s3615_s9  ;;  %p3621_p7 = scmp.lt.s32.totalorder %s3615_s9, %s3615_s9 }
  0x2e   :  { %p3622_p8 = por %p3621_p7, %p3620_p6 }
  0x30   :  { %p3623_p9 = pnand %p3622_p8, %p3616_p5 }
  0x32   :  { %3626 = shalt.err (!%p3623_p9)
}
  0x33   :  { %s3706_s3 = smov 512   ;;  %s3707_s10 = smov 32  }
  0x34   :  { %26 = dma.hbm_to_vmem [thread:$0]  %s4015_s0, 32768, %s21_s14, [#allocation5], %s3706_s3, %s3706_s3, %s3707_s10  }
  0x35   :  { %s3708_s13 = smov [#allocation9]   ;;  %s3709_s16 = smov [#allocation12]  }
  0x36   :  { %s44_s15 = sshll.u32 %s3708_s13, 4  ;;  %s68_s17 = sshll.u32 %s3709_s16, 4  ;;  %s45_s15 = int_to_ptr.vmem [resolvable:$true] %s44_s15  ;;  %s69_s17 = int_to_ptr.vmem [resolvable:$true] %s68_s17 }
  0x37   :  { %s3627_s20 = scalar_lea.hbm %s4017_s2, 8192 }
  0x38   :  { %p3628_p10 = scmp.ne.s32.totalorder %s4017_s2, %s3627_s20  ;;  %p3631_p11 = scmp.lt.u32.totalorder %s3627_s20, %s4017_s2 }
  0x3a   :  { %p3633_p12 = pnand %p3631_p11, %p3628_p10 }
  0x3c   :  { %3636 = shalt.err (!%p3633_p12)
}
  0x3d   :  { %s3637_s0 = scalar_lea.vmem %s45_s15, 8192  ;;  %p3642_p0 = scmp.lt.s32.totalorder %s45_s15, %s45_s15 }
  0x3e   :  { %p3638_p13 = scmp.ne.s32.totalorder %s45_s15, %s3637_s0  ;;  %p3643_p1 = scmp.lt.s32.totalorder %s3637_s0, %s3637_s0 }
  0x40   :  { %p3644_p2 = por %p3643_p1, %p3642_p0 }
  0x42   :  { %p3645_p3 = pnand %p3644_p2, %p3638_p13 }
  0x44   :  { %3648 = shalt.err (!%p3645_p3)
}
  0x45   :  { %50 = dma.hbm_to_vmem [thread:$0]  %s4017_s2, 8192, %s45_s15, [#allocation8], %s3702_s7, %s3702_s7, %s3703_s8  }
  0x46   :  { %s3649_s27 = scalar_lea.hbm %s4019_s4, 2048 }
  0x47   :  { %p3650_p4 = scmp.ne.s32.totalorder %s4019_s4, %s3649_s27  ;;  %p3653_p5 = scmp.lt.u32.totalorder %s3649_s27, %s4019_s4 }
  0x49   :  { %p3655_p6 = pnand %p3653_p5, %p3650_p4 }
  0x4b   :  { %3658 = shalt.err (!%p3655_p6)
}
  0x4c   :  { %s3659_s3 = scalar_lea.vmem %s69_s17, 2048  ;;  %p3664_p8 = scmp.lt.s32.totalorder %s69_s17, %s69_s17 }
  0x4d   :  { %p3660_p7 = scmp.ne.s32.totalorder %s69_s17, %s3659_s3  ;;  %p3665_p9 = scmp.lt.s32.totalorder %s3659_s3, %s3659_s3 }
  0x4f   :  { %p3666_p10 = por %p3665_p9, %p3664_p8 }
  0x51   :  { %p3667_p11 = pnand %p3666_p10, %p3660_p7 }
  0x53   :  { %3670 = shalt.err (!%p3667_p11)
}
  0x54   :  { %74 = dma.hbm_to_vmem [thread:$0]  %s4019_s4, 2048, %s69_s17, [#allocation11], %s3702_s7, %s3702_s7, %s3703_s8  }
  0x55   :  { %3693 = dma.done.wait [#allocation5], 32768  }
  0x56   :  { %3694 = vsyncadd [#allocation5], 4294934528 }
  0x57   :  { %3695 = dma.done.wait [#allocation8], 16384  }
  0x58   :  { %3696 = vsyncadd [#allocation8], 4294950912 }
  0x59   :  { %3697 = dma.done.wait [#allocation11], 4096  }
  0x5a   :  { %3698 = vsyncadd [#allocation11], 4294963200  ;;  %v3710_v0 = vmov 0.0|0.0   ;;  %v1016_v1 = vld [vmem:[#allocation7] sm:$0xff]  ;;  %v1017_v2 = vld [vmem:[#allocation7 + $0x8] sm:$0xff] }
  0x5b   :  { %3298 = vmatprep.subr.bf16.mxu1 %v3710_v0  ;;  %v1018_v3 = vld [vmem:[#allocation7 + $0x10] sm:$0xff]  ;;  %v3820_v4 = vpack.c.bf16 %v1017_v2, %v1016_v1  ;;  %v1019_v5 = vld [vmem:[#allocation7 + $0x18] sm:$0xff]  ;;  %v160_v6 = vld [vmem:[#allocation12] sm:$0xff] }
  0x5c   :  { %v3823_v7 = vpack.c.bf16 %v1019_v5, %v1018_v3  ;;  %v1020_v8 = vld [vmem:[#allocation7 + $0x20] sm:$0xff]  ;;  %v161_v9 = vld [vmem:[#allocation12 + $0x8] sm:$0xff]  ;;  %v162_v12 = vld [vmem:[#allocation12 + $0x10] sm:$0xff] }
  0x5d   :  { %3314 = vmatpush1.bf16.msra.mxu1 %v3820_v4  ;;  %v1021_v10 = vld [vmem:[#allocation7 + $0x28] sm:$0xff]  ;;  %v3138_v11 = vpack.c.bf16 %v161_v9, %v160_v6  ;;  %v163_v13 = vld [vmem:[#allocation12 + $0x18] sm:$0xff]  ;;  %v164_v15 = vld [vmem:[#allocation12 + $0x20] sm:$0xff] }
  0x5e   :  { %3299 = vmatprep.subr.bf16.mxu1 %v3710_v0  ;;  %v3142_v14 = vpack.c.bf16 %v163_v13, %v162_v12  ;;  %v165_v16 = vld [vmem:[#allocation12 + $0x28] sm:$0xff]  ;;  %v3827_v17 = vpack.c.bf16 %v1021_v10, %v1020_v8  ;;  %v1022_v18 = vld [vmem:[#allocation7 + $0x30] sm:$0xff]  ;;  %v1023_v19 = vld [vmem:[#allocation7 + $0x38] sm:$0xff] }
  0x5f   :  { %3139 = vmatprep.subr.bf16.mxu0 %v3138_v11  ;;  %v3146_v20 = vpack.c.bf16 %v165_v16, %v164_v15  ;;  %v166_v21 = vld [vmem:[#allocation12 + $0x30] sm:$0xff]  ;;  %v167_v22 = vld [vmem:[#allocation12 + $0x38] sm:$0xff]  ;;  %v3831_v23 = vpack.c.bf16 %v1023_v19, %v1022_v18  ;;  %v1024_v24 = vld [vmem:[#allocation7 + $0x40] sm:$0xff] }
  0x60   :  { %3141 = vmatpush3.bf16.msra.mxu0 %v3138_v11  ;;  %v1025_v25 = vld [vmem:[#allocation7 + $0x48] sm:$0xff]  ;;  %v3150_v26 = vpack.c.bf16 %v167_v22, %v166_v21  ;;  %v168_v27 = vld [vmem:[#allocation12 + $0x40] sm:$0xff]  ;;  %v1026_v31 = vld [vmem:[#allocation7 + $0x50] sm:$0xff] }
  0x61   :  { %3315 = vmatpush1.bf16.msra.mxu1 %v3823_v7  ;;  %3143 = vmatprep.subr.bf16.mxu0 %v3142_v14  ;;  %v169_v28 = vld [vmem:[#allocation12 + $0x48] sm:$0xff]  ;;  %v96_v29 = vld [vmem:[#allocation9] sm:$0xff]  ;;  %v3835_v30 = vpack.c.bf16 %v1025_v25, %v1024_v24  ;;  %v1027_v32 = vld [vmem:[#allocation7 + $0x58] sm:$0xff] }
  0x62   :  { %3300 = vmatprep.subr.bf16.mxu1 %v3710_v0  ;;  %2914 = vmatprep.mubr.f32.mxu0 %v96_v29  ;;  %v3154_v33 = vpack.c.bf16 %v169_v28, %v168_v27  ;;  %v170_v34 = vld [vmem:[#allocation12 + $0x50] sm:$0xff]  ;;  %v171_v35 = vld [vmem:[#allocation12 + $0x58] sm:$0xff]  ;;  %v3839_v36 = vpack.c.bf16 %v1027_v32, %v1026_v31  ;;  %v905_v37 = vld [vmem:[#allocation4 + $0x488] sm:$0xff] }
  0x63   :  { %v1028_v38 = vld [vmem:[#allocation7 + $0x60] sm:$0xff]  ;;  %v1029_v39 = vld [vmem:[#allocation7 + $0x68] sm:$0xff]  ;;  %v3158_v40 = vpack.c.bf16 %v171_v35, %v170_v34  ;;  %1324 = vmatprep.mubr.f32.mxu1 %v905_v37  ;;  %v1030_v44 = vld [vmem:[#allocation7 + $0x70] sm:$0xff] }
  0x64   :  { %3145 = vmatpush3.bf16.msra.mxu0 %v3142_v14  ;;  %v172_v41 = vld [vmem:[#allocation12 + $0x60] sm:$0xff]  ;;  %v173_v42 = vld [vmem:[#allocation12 + $0x68] sm:$0xff]  ;;  %v3843_v43 = vpack.c.bf16 %v1029_v39, %v1028_v38  ;;  %v1031_v45 = vld [vmem:[#allocation7 + $0x78] sm:$0xff] }
  0x65   :  { %3316 = vmatpush1.bf16.msra.mxu1 %v3827_v17  ;;  %3147 = vmatprep.subr.bf16.mxu0 %v3146_v20  ;;  %v3162_v46 = vpack.c.bf16 %v173_v42, %v172_v41  ;;  %v174_v47 = vld [vmem:[#allocation12 + $0x70] sm:$0xff]  ;;  %v175_v48 = vld [vmem:[#allocation12 + $0x78] sm:$0xff]  ;;  %v3847_v49 = vpack.c.bf16 %v1031_v45, %v1030_v44  ;;  %v1032_v50 = vld [vmem:[#allocation7 + $0x80] sm:$0xff] }
  0x66   :  { %3301 = vmatprep.subr.bf16.mxu1 %v3710_v0  ;;  %v1033_v51 = vld [vmem:[#allocation7 + $0x88] sm:$0xff]  ;;  %v3166_v52 = vpack.c.bf16 %v175_v48, %v174_v47  ;;  %v1034_v54 = vld [vmem:[#allocation7 + $0x90] sm:$0xff]  ;;  %v1035_v55 = vld [vmem:[#allocation7 + $0x98] sm:$0xff] }
  0x67   :  { %v3851_v53 = vpack.c.bf16 %v1033_v51, %v1032_v50  ;;  %v3855_v56 = vpack.c.bf16 %v1035_v55, %v1034_v54  ;;  %v97_v57 = vld [vmem:[#allocation9 + $0x8] sm:$0xff]  ;;  %v1036_v58 = vld [vmem:[#allocation7 + $0xa0] sm:$0xff]  ;;  %v98_v60 = vld [vmem:[#allocation9 + $0x10] sm:$0xff] }
  0x68   :  { %3149 = vmatpush3.bf16.msra.mxu0 %v3146_v20  ;;  %v1037_v59 = vld [vmem:[#allocation7 + $0xa8] sm:$0xff]  ;;  %v99_v62 = vld [vmem:[#allocation9 + $0x18] sm:$0xff]  ;;  %v1038_v63 = vld [vmem:[#allocation7 + $0xb0] sm:$0xff] }
  0x69   :  { %3317 = vmatpush1.bf16.msra.mxu1 %v3831_v23  ;;  %3151 = vmatprep.subr.bf16.mxu0 %v3150_v26  ;;  %v3860_v61 = vpack.c.bf16 %v1037_v59, %v1036_v58  ;;  %v1039_v1 = vld [vmem:[#allocation7 + $0xb8] sm:$0xff]  ;;  %v100_v2 = vld [vmem:[#allocation9 + $0x20] sm:$0xff]  ;;  %v101_v5 = vld [vmem:[#allocation9 + $0x28] sm:$0xff] }
  0x6a   :  { %3302 = vmatprep.subr.bf16.mxu1 %v3710_v0  ;;  %v3866_v3 = vpack.c.bf16 %v1039_v1, %v1038_v63  ;;  %v1040_v6 = vld [vmem:[#allocation7 + $0xc0] sm:$0xff]  ;;  %v1041_v8 = vld [vmem:[#allocation7 + $0xc8] sm:$0xff]  ;;  %v102_v9 = vld [vmem:[#allocation9 + $0x30] sm:$0xff] }
  0x6b   :  { %v103_v10 = vld [vmem:[#allocation9 + $0x38] sm:$0xff]  ;;  %v1042_v11 = vld [vmem:[#allocation7 + $0xd0] sm:$0xff]  ;;  %v104_v13 = vld [vmem:[#allocation9 + $0x40] sm:$0xff] }
  0x6c   :  { %3153 = vmatpush3.bf16.msra.mxu0 %v3150_v26  ;;  %v1043_v12 = vld [vmem:[#allocation7 + $0xd8] sm:$0xff]  ;;  %v105_v14 = vld [vmem:[#allocation9 + $0x48] sm:$0xff]  ;;  %v1044_v15 = vld [vmem:[#allocation7 + $0xe0] sm:$0xff] }
  0x6d   :  { %3318 = vmatpush1.bf16.msra.mxu1 %v3835_v30  ;;  %3155 = vmatprep.subr.bf16.mxu0 %v3154_v33  ;;  %v1045_v16 = vld [vmem:[#allocation7 + $0xe8] sm:$0xff]  ;;  %v106_v18 = vld [vmem:[#allocation9 + $0x50] sm:$0xff]  ;;  %v107_v19 = vld [vmem:[#allocation9 + $0x58] sm:$0xff] }
  0x6e   :  { %3303 = vmatprep.subr.bf16.mxu1 %v3710_v0  ;;  %v1046_v20 = vld [vmem:[#allocation7 + $0xf0] sm:$0xff]  ;;  %v1047_v21 = vld [vmem:[#allocation7 + $0xf8] sm:$0xff]  ;;  %v108_v22 = vld [vmem:[#allocation9 + $0x60] sm:$0xff] }
  0x6f   :  { %v109_v24 = vld [vmem:[#allocation9 + $0x68] sm:$0xff]  ;;  %v1048_v25 = vld [vmem:[#allocation7 + $0x100] sm:$0xff]  ;;  %v110_v27 = vld [vmem:[#allocation9 + $0x70] sm:$0xff] }
  0x70   :  { %3157 = vmatpush3.bf16.msra.mxu0 %v3154_v33  ;;  %v1049_v26 = vld [vmem:[#allocation7 + $0x108] sm:$0xff]  ;;  %v904_v28 = vld [vmem:[#allocation4 + $0x480] sm:$0xff]  ;;  %v1050_v32 = vld [vmem:[#allocation7 + $0x110] sm:$0xff] }
  0x71   :  { %3319 = vmatpush1.bf16.msra.mxu1 %v3839_v36  ;;  %3159 = vmatprep.subr.bf16.mxu0 %v3158_v40  ;;  %v3219_v29 = vpack.c.bf16 %v1049_v26, %v1048_v25  ;;  %v909_v31 = vld [vmem:[#allocation4 + $0x4a8] sm:$0xff]  ;;  %v1051_v33 = vld [vmem:[#allocation7 + $0x118] sm:$0xff]  ;;  %v112_v34 = vld [vmem:[#allocation9 + $0x80] sm:$0xff] }
  0x72   :  { %3304 = vmatprep.subr.bf16.mxu1 %v3710_v0  ;;  %v908_v35 = vld [vmem:[#allocation4 + $0x4a0] sm:$0xff]  ;;  %v113_v37 = vld [vmem:[#allocation9 + $0x88] sm:$0xff]  ;;  %v114_v41 = vld [vmem:[#allocation9 + $0x90] sm:$0xff] }
  0x73   :  { %v913_v38 = vld [vmem:[#allocation4 + $0x4c8] sm:$0xff]  ;;  %v1052_v39 = vld [vmem:[#allocation7 + $0x120] sm:$0xff]  ;;  %v115_v44 = vld [vmem:[#allocation9 + $0x98] sm:$0xff] }
  0x74   :  { %3161 = vmatpush3.bf16.msra.mxu0 %v3158_v40  ;;  %v1053_v40 = vld [vmem:[#allocation7 + $0x128] sm:$0xff]  ;;  %v912_v42 = vld [vmem:[#allocation4 + $0x4c0] sm:$0xff]  ;;  %v1055_v47 = vld [vmem:[#allocation7 + $0x138] sm:$0xff] }
  0x75   :  { %3320 = vmatpush1.bf16.msra.mxu1 %v3843_v43  ;;  %3163 = vmatprep.subr.bf16.mxu0 %v3162_v46  ;;  %v917_v45 = vld [vmem:[#allocation4 + $0x4e8] sm:$0xff]  ;;  %v116_v48 = vld [vmem:[#allocation9 + $0xa0] sm:$0xff]  ;;  %v119_v59 = vld [vmem:[#allocation9 + $0xb8] sm:$0xff] }
  0x76   :  { %3305 = vmatprep.subr.bf16.mxu1 %v3710_v0  ;;  %v117_v51 = vld [vmem:[#allocation9 + $0xa8] sm:$0xff]  ;;  %v1056_v54 = vld [vmem:[#allocation7 + $0x140] sm:$0xff]  ;;  %v1058_v1 = vld [vmem:[#allocation7 + $0x150] sm:$0xff] }
  0x77   :  { %v1057_v55 = vld [vmem:[#allocation7 + $0x148] sm:$0xff]  ;;  %v920_v58 = vld [vmem:[#allocation4 + $0x500] sm:$0xff] }
  0x78   :  { %3165 = vmatpush3.bf16.msra.mxu0 %v3162_v46  ;;  %v1054_v46 = vld [vmem:[#allocation7 + $0x130] sm:$0xff]  ;;  %v120_v63 = vld [vmem:[#allocation9 + $0xc0] sm:$0xff]  ;;  %v1065_v26 = vld [vmem:[#allocation7 + $0x188] sm:$0xff] }
  0x79   :  { %3321 = vmatpush1.bf16.msra.mxu1 %v3847_v49  ;;  %3167 = vmatprep.subr.bf16.mxu0 %v3166_v52  ;;  %v3228_v50 = vpack.c.bf16 %v1055_v47, %v1054_v46  ;;  %v1064_v25 = vld [vmem:[#allocation7 + $0x180] sm:$0xff]  ;;  %v953_v46 = vld [vmem:[#allocation4 + $0x608] sm:$0xff]  ;;  %v134_v47 = vld [vmem:[#allocation9 + $0x130] sm:$0xff] }
  0x7a   :  { %3306 = vmatprep.subr.bf16.mxu1 %v3710_v0 }
  0x7c   :  { %3169 = vmatpush3.bf16.msra.mxu0 %v3166_v52  ;;  %v921_v52 = vld [vmem:[#allocation4 + $0x508] sm:$0xff] }
  0x7d   :  { %3322 = vmatpush1.bf16.msra.mxu1 %v3851_v53  ;;  %3170 = vmatprep.subr.bf16.mxu0 %v3710_v0 }
  0x7e   :  { %3307 = vmatprep.subr.bf16.mxu1 %v3710_v0 }
  0x7f   :  { %2915 = vmatmul.mubr.f32.vlgmr.msra.gmra.mrb[0].mxu0 %v97_v57  ;;  %v118_v57 = vld [vmem:[#allocation9 + $0xb0] sm:$0xff] }
  0x80   :  { %2917 = vmatprep.mubr.f32.mxu0 %v98_v60  ;;  %3172 = vmatpush1.bf16.msra.mxu0 %v3820_v4  ;;  %v3872_v4 = vpack.c.bf16 %v1041_v8, %v1040_v6  ;;  %v3231_v60 = vpack.c.bf16 %v1057_v55, %v1056_v54  ;;  %v929_v6 = vld [vmem:[#allocation4 + $0x548] sm:$0xff]  ;;  %v122_v8 = vld [vmem:[#allocation9 + $0xd0] sm:$0xff]  ;;  %v136_v54 = vld [vmem:[#allocation9 + $0x140] sm:$0xff] }
  0x81   :  { %3323 = vmatpush1.bf16.msra.mxu1 %v3855_v56  ;;  %3173 = vmatprep.subr.bf16.mxu0 %v3710_v0 }
  0x82   :  { %3308 = vmatprep.subr.bf16.mxu1 %v3710_v0 }
  0x83   :  { %2918 = vmatmul.mubr.f32.gmra.mrb[2].mxu0 %v99_v62  ;;  %v925_v62 = vld [vmem:[#allocation4 + $0x528] sm:$0xff] }
  0x84   :  { %2920 = vmatprep.mubr.f32.mxu0 %v100_v2  ;;  %3175 = vmatpush1.bf16.msra.mxu0 %v3823_v7  ;;  %v3878_v7 = vpack.c.bf16 %v1043_v12, %v1042_v11  ;;  %v1059_v2 = vld [vmem:[#allocation7 + $0x158] sm:$0xff]  ;;  %v1061_v11 = vld [vmem:[#allocation7 + $0x168] sm:$0xff]  ;;  %v928_v12 = vld [vmem:[#allocation4 + $0x540] sm:$0xff] }
  0x85   :  { %3324 = vmatpush1.bf16.msra.mxu1 %v3860_v61  ;;  %3176 = vmatprep.subr.bf16.mxu0 %v3710_v0 }
  0x86   :  { %3309 = vmatprep.subr.bf16.mxu1 %v3710_v0 }
  0x87   :  { %2921 = vmatmul.mubr.f32.gmra.mrb[4].mxu0 %v101_v5  ;;  %v121_v5 = vld [vmem:[#allocation9 + $0xc8] sm:$0xff] }
  0x88   :  { %2923 = vmatprep.mubr.f32.mxu0 %v102_v9  ;;  %3178 = vmatpush1.bf16.msra.mxu0 %v3827_v17  ;;  %v3884_v17 = vpack.c.bf16 %v1045_v16, %v1044_v15  ;;  %v3234_v9 = vpack.c.bf16 %v1059_v2, %v1058_v1  ;;  %v124_v15 = vld [vmem:[#allocation9 + $0xe0] sm:$0xff]  ;;  %v1077_v2 = vld [vmem:[#allocation7 + $0x1e8] sm:$0xff] }
  0x89   :  { %3325 = vmatpush1.bf16.msra.mxu1 %v3866_v3  ;;  %3179 = vmatprep.subr.bf16.mxu0 %v3710_v0  ;;  %v1076_v1 = vld [vmem:[#allocation7 + $0x1e0] sm:$0xff] }
  0x8a   :  { %3310 = vmatprep.subr.bf16.mxu1 %v3710_v0 }
  0x8b   :  { %2924 = vmatmul.mubr.f32.gmra.mrb[6].mxu0 %v103_v10  ;;  %v1060_v10 = vld [vmem:[#allocation7 + $0x160] sm:$0xff] }
  0x8c   :  { %2926 = vmatprep.mubr.f32.mxu0 %v104_v13  ;;  %3181 = vmatpush1.bf16.msra.mxu0 %v3831_v23  ;;  %v3890_v23 = vpack.c.bf16 %v1047_v21, %v1046_v20  ;;  %v123_v13 = vld [vmem:[#allocation9 + $0xd8] sm:$0xff]  ;;  %v3237_v16 = vpack.c.bf16 %v1061_v11, %v1060_v10  ;;  %v125_v20 = vld [vmem:[#allocation9 + $0xe8] sm:$0xff]  ;;  %v1078_v10 = vld [vmem:[#allocation7 + $0x1f0] sm:$0xff] }
  0x8d   :  { %3326 = vmatpush1.bf16.msra.mxu1 %v3872_v4  ;;  %3182 = vmatprep.subr.bf16.mxu0 %v3710_v0  ;;  %v937_v21 = vld [vmem:[#allocation4 + $0x588] sm:$0xff]  ;;  %v1079_v11 = vld [vmem:[#allocation7 + $0x1f8] sm:$0xff] }
  0x8e   :  { %3311 = vmatprep.subr.bf16.mxu1 %v3710_v0 }
  0x8f   :  { %2927 = vmatmul.mubr.f32.gmra.mrb[8].mxu0 %v105_v14  ;;  %v933_v14 = vld [vmem:[#allocation4 + $0x568] sm:$0xff] }
  0x90   :  { %2929 = vmatprep.mubr.f32.mxu0 %v106_v18  ;;  %3184 = vmatpush1.bf16.msra.mxu0 %v3835_v30  ;;  %v111_v30 = vld [vmem:[#allocation9 + $0x78] sm:$0xff]  ;;  %v1062_v18 = vld [vmem:[#allocation7 + $0x170] sm:$0xff] }
  0x91   :  { %3327 = vmatpush1.bf16.msra.mxu1 %v3878_v7  ;;  %3185 = vmatprep.subr.bf16.mxu0 %v3710_v0 }
  0x92   :  { %3312 = vmatprep.subr.bf16.mxu1 %v3710_v0 }
  0x93   :  { %2930 = vmatmul.mubr.f32.gmra.mrb[10].mxu0 %v107_v19  ;;  %v1063_v19 = vld [vmem:[#allocation7 + $0x178] sm:$0xff] }
  0x94   :  { %2932 = vmatprep.mubr.f32.mxu0 %v108_v22  ;;  %3187 = vmatpush1.bf16.msra.mxu0 %v3839_v36  ;;  %v3222_v36 = vpack.c.bf16 %v1051_v33, %v1050_v32  ;;  %v126_v22 = vld [vmem:[#allocation9 + $0xf0] sm:$0xff]  ;;  %v1067_v32 = vld [vmem:[#allocation7 + $0x198] sm:$0xff]  ;;  %v129_v33 = vld [vmem:[#allocation9 + $0x108] sm:$0xff] }
  0x95   :  { %3328 = vmatpush1.bf16.msra.mxu1 %v3884_v17  ;;  %3188 = vmatprep.subr.bf16.mxu0 %v3710_v0 }
  0x96   :  { %3313 = vmatprep.subr.bf16.mxu1 %v3710_v0 }
  0x97   :  { %2933 = vmatmul.mubr.f32.gmra.mrb[12].mxu0 %v109_v24  ;;  %v3240_v24 = vpack.c.bf16 %v1063_v19, %v1062_v18  ;;  %v968_v18 = vld [vmem:[#allocation4 + $0x680] sm:$0xff]  ;;  %v143_v19 = vld [vmem:[#allocation9 + $0x178] sm:$0xff] }
  0x98   :  { %2935 = vmatprep.mubr.f32.mxu0 %v110_v27  ;;  %3190 = vmatpush1.bf16.msra.mxu0 %v3843_v43  ;;  %v3225_v43 = vpack.c.bf16 %v1053_v40, %v1052_v39  ;;  %v127_v27 = vld [vmem:[#allocation9 + $0xf8] sm:$0xff]  ;;  %v949_v40 = vld [vmem:[#allocation4 + $0x5e8] sm:$0xff] }
  0x99   :  { %3329 = vmatpush1.bf16.msra.mxu1 %v3890_v23  ;;  %3191 = vmatprep.subr.bf16.mxu0 %v3710_v0  ;;  %v131_v39 = vld [vmem:[#allocation9 + $0x118] sm:$0xff] }
  0x9a   :  { %3218 = vmatprep.subr.bf16.mxu1 %v3710_v0 }
  0x9b   :  { %2936 = vmatmul.mubr.f32.gmra.mrb[14].mxu0 %v111_v30  ;;  %v3243_v30 = vpack.c.bf16 %v1065_v26, %v1064_v25  ;;  %v146_v25 = vld [vmem:[#allocation9 + $0x190] sm:$0xff]  ;;  %v147_v26 = vld [vmem:[#allocation9 + $0x198] sm:$0xff] }
  0x9c   :  { %1325 = vmatmul.mubr.f32.vlgmr.msra.gmra.mrb[0].mxu1 %v904_v28  ;;  %2938 = vmatprep.mubr.f32.mxu0 %v112_v34  ;;  %v941_v28 = vld [vmem:[#allocation4 + $0x5a8] sm:$0xff] }
  0x9d   :  { %3220 = vmatpush1.bf16.msra.mxu1 %v3219_v29  ;;  %1329 = vmatprep.mubr.f32.mxu1 %v909_v31  ;;  %v128_v29 = vld [vmem:[#allocation9 + $0x100] sm:$0xff]  ;;  %v1066_v31 = vld [vmem:[#allocation7 + $0x190] sm:$0xff]  ;;  %v945_v34 = vld [vmem:[#allocation4 + $0x5c8] sm:$0xff] }
  0x9e   :  { %3221 = vmatprep.subr.bf16.mxu1 %v3710_v0  ;;  %3193 = vmatpush1.bf16.msra.mxu0 %v3847_v49  ;;  %v916_v49 = vld [vmem:[#allocation4 + $0x4e0] sm:$0xff] }
  0x9f   :  { %2939 = vmatmul.mubr.f32.gmra.mrb[16].mxu0 %v113_v37  ;;  %3194 = vmatprep.subr.bf16.mxu0 %v3710_v0  ;;  %v1068_v37 = vld [vmem:[#allocation7 + $0x1a0] sm:$0xff] }
  0xa0   :  { %1330 = vmatmul.mubr.f32.gmra.mrb[2].mxu1 %v908_v35  ;;  %2941 = vmatprep.mubr.f32.mxu0 %v114_v41  ;;  %v130_v35 = vld [vmem:[#allocation9 + $0x110] sm:$0xff]  ;;  %v132_v41 = vld [vmem:[#allocation9 + $0x120] sm:$0xff] }
  0xa1   :  { %1334 = vmatprep.mubr.f32.mxu1 %v913_v38  ;;  %3223 = vmatpush1.bf16.msra.mxu1 %v3222_v36  ;;  %v3246_v36 = vpack.c.bf16 %v1067_v32, %v1066_v31  ;;  %v1069_v38 = vld [vmem:[#allocation7 + $0x1a8] sm:$0xff]  ;;  %v150_v31 = vld [vmem:[#allocation9 + $0x1b0] sm:$0xff]  ;;  %v984_v32 = vld [vmem:[#allocation4 + $0x700] sm:$0xff] }
  0xa2   :  { %3224 = vmatprep.subr.bf16.mxu1 %v3710_v0  ;;  %3196 = vmatpush1.bf16.msra.mxu0 %v3851_v53  ;;  %v924_v53 = vld [vmem:[#allocation4 + $0x520] sm:$0xff] }
  0xa3   :  { %2942 = vmatmul.mubr.f32.gmra.mrb[18].mxu0 %v115_v44  ;;  %3197 = vmatprep.subr.bf16.mxu0 %v3710_v0  ;;  %v1071_v44 = vld [vmem:[#allocation7 + $0x1b8] sm:$0xff] }
  0xa4   :  { %1335 = vmatmul.mubr.f32.gmra.mrb[4].mxu1 %v912_v42  ;;  %2944 = vmatprep.mubr.f32.mxu0 %v116_v48  ;;  %v3249_v42 = vpack.c.bf16 %v1069_v38, %v1068_v37  ;;  %v993_v37 = vld [vmem:[#allocation4 + $0x748] sm:$0xff]  ;;  %v154_v38 = vld [vmem:[#allocation9 + $0x1d0] sm:$0xff] }
  0xa5   :  { %1339 = vmatprep.mubr.f32.mxu1 %v917_v45  ;;  %3226 = vmatpush1.bf16.msra.mxu1 %v3225_v43  ;;  %v1070_v43 = vld [vmem:[#allocation7 + $0x1b0] sm:$0xff]  ;;  %v133_v45 = vld [vmem:[#allocation9 + $0x128] sm:$0xff] }
  0xa6   :  { %3227 = vmatprep.subr.bf16.mxu1 %v3710_v0  ;;  %3199 = vmatpush1.bf16.msra.mxu0 %v3855_v56  ;;  %v932_v56 = vld [vmem:[#allocation4 + $0x560] sm:$0xff]  ;;  %v3252_v48 = vpack.c.bf16 %v1071_v44, %v1070_v43  ;;  %v157_v43 = vld [vmem:[#allocation9 + $0x1e8] sm:$0xff] }
  0xa7   :  { %2945 = vmatmul.mubr.f32.gmra.mrb[20].mxu0 %v117_v51  ;;  %3200 = vmatprep.subr.bf16.mxu0 %v3710_v0  ;;  %v135_v51 = vld [vmem:[#allocation9 + $0x138] sm:$0xff]  ;;  %v1001_v44 = vld [vmem:[#allocation4 + $0x788] sm:$0xff] }
  0xa8   :  { %1340 = vmatmul.mubr.f32.gmra.mrb[6].mxu1 %v916_v49  ;;  %2947 = vmatprep.mubr.f32.mxu0 %v118_v57  ;;  %v1072_v49 = vld [vmem:[#allocation7 + $0x1c0] sm:$0xff]  ;;  %v1074_v57 = vld [vmem:[#allocation7 + $0x1d0] sm:$0xff] }
  0xa9   :  { %1344 = vmatprep.mubr.f32.mxu1 %v921_v52  ;;  %3229 = vmatpush1.bf16.msra.mxu1 %v3228_v50  ;;  %v1073_v50 = vld [vmem:[#allocation7 + $0x1c8] sm:$0xff] }
  0xaa   :  { %3230 = vmatprep.subr.bf16.mxu1 %v3710_v0  ;;  %3202 = vmatpush1.bf16.msra.mxu0 %v3860_v61  ;;  %v936_v61 = vld [vmem:[#allocation4 + $0x580] sm:$0xff]  ;;  %v957_v52 = vld [vmem:[#allocation4 + $0x628] sm:$0xff]  ;;  %v3255_v55 = vpack.c.bf16 %v1073_v50, %v1072_v49 }
  0xab   :  { %2948 = vmatmul.mubr.f32.gmra.mrb[22].mxu0 %v119_v59  ;;  %3203 = vmatprep.subr.bf16.mxu0 %v3710_v0  ;;  %v956_v59 = vld [vmem:[#allocation4 + $0x620] sm:$0xff] }
  0xac   :  { %1345 = vmatmul.mubr.f32.gmra.mrb[8].mxu1 %v920_v58  ;;  %2950 = vmatprep.mubr.f32.mxu0 %v120_v63  ;;  %v1075_v58 = vld [vmem:[#allocation7 + $0x1d8] sm:$0xff]  ;;  %v1004_v49 = vld [vmem:[#allocation4 + $0x7a0] sm:$0xff] }
  0xad   :  { %1349 = vmatprep.mubr.f32.mxu1 %v925_v62  ;;  %3232 = vmatpush1.bf16.msra.mxu1 %v3231_v60  ;;  %v961_v60 = vld [vmem:[#allocation4 + $0x648] sm:$0xff]  ;;  %v138_v62 = vld [vmem:[#allocation9 + $0x150] sm:$0xff]  ;;  %v3258_v63 = vpack.c.bf16 %v1075_v58, %v1074_v57  ;;  %v760_v50 = vld [vmem:[#allocation4] sm:$0xff] }
  0xae   :  { %3233 = vmatprep.subr.bf16.mxu1 %v3710_v0  ;;  %3205 = vmatpush1.bf16.msra.mxu0 %v3866_v3  ;;  %v940_v3 = vld [vmem:[#allocation4 + $0x5a0] sm:$0xff]  ;;  %v769_v57 = vld [vmem:[#allocation4 + $0x48] sm:$0xff] }
  0xaf   :  { %2951 = vmatmul.mubr.f32.gmra.mrb[24].mxu0 %v121_v5  ;;  %3206 = vmatprep.subr.bf16.mxu0 %v3710_v0  ;;  %v139_v5 = vld [vmem:[#allocation9 + $0x158] sm:$0xff]  ;;  %v1012_v58 = vld [vmem:[#allocation4 + $0x7e0] sm:$0xff] }
  0xb0   :  { %1350 = vmatmul.mubr.f32.gmra.mrb[10].mxu1 %v924_v53  ;;  %2953 = vmatprep.mubr.f32.mxu0 %v122_v8  ;;  %v960_v53 = vld [vmem:[#allocation4 + $0x640] sm:$0xff] }
  0xb1   :  { %1354 = vmatprep.mubr.f32.mxu1 %v929_v6  ;;  %3235 = vmatpush1.bf16.msra.mxu1 %v3234_v9  ;;  %v965_v6 = vld [vmem:[#allocation4 + $0x668] sm:$0xff]  ;;  %v140_v8 = vld [vmem:[#allocation9 + $0x160] sm:$0xff]  ;;  %v3261_v9 = vpack.c.bf16 %v1077_v2, %v1076_v1  ;;  %v767_v1 = vld [vmem:[#allocation4 + $0x38] sm:$0xff] }
  0xb2   :  { %3236 = vmatprep.subr.bf16.mxu1 %v3710_v0  ;;  %3208 = vmatpush1.bf16.msra.mxu0 %v3872_v4  ;;  %v944_v4 = vld [vmem:[#allocation4 + $0x5c0] sm:$0xff]  ;;  %v777_v2 = vld [vmem:[#allocation4 + $0x88] sm:$0xff] }
  0xb3   :  { %2954 = vmatmul.mubr.f32.gmra.mrb[26].mxu0 %v123_v13  ;;  %3209 = vmatprep.subr.bf16.mxu0 %v3710_v0  ;;  %v141_v13 = vld [vmem:[#allocation9 + $0x168] sm:$0xff] }
  0xb4   :  { %1355 = vmatmul.mubr.f32.gmra.mrb[12].mxu1 %v928_v12  ;;  %2956 = vmatprep.mubr.f32.mxu0 %v124_v15  ;;  %v964_v12 = vld [vmem:[#allocation4 + $0x660] sm:$0xff]  ;;  %v142_v15 = vld [vmem:[#allocation9 + $0x170] sm:$0xff] }
  0xb5   :  { %1359 = vmatprep.mubr.f32.mxu1 %v933_v14  ;;  %3238 = vmatpush1.bf16.msra.mxu1 %v3237_v16  ;;  %v969_v14 = vld [vmem:[#allocation4 + $0x688] sm:$0xff]  ;;  %v3264_v16 = vpack.c.bf16 %v1079_v11, %v1078_v10  ;;  %v780_v10 = vld [vmem:[#allocation4 + $0xa0] sm:$0xff]  ;;  %v775_v11 = vld [vmem:[#allocation4 + $0x78] sm:$0xff] }
  0xb6   :  { %3239 = vmatprep.subr.bf16.mxu1 %v3710_v0  ;;  %3211 = vmatpush1.bf16.msra.mxu0 %v3878_v7  ;;  %v948_v7 = vld [vmem:[#allocation4 + $0x5e0] sm:$0xff] }
  0xb7   :  { %2957 = vmatmul.mubr.f32.gmra.mrb[28].mxu0 %v125_v20  ;;  %3212 = vmatprep.subr.bf16.mxu0 %v3710_v0  ;;  %v144_v20 = vld [vmem:[#allocation9 + $0x180] sm:$0xff] }
  0xb8   :  { %1360 = vmatmul.mubr.f32.gmra.mrb[14].mxu1 %v932_v56  ;;  %2959 = vmatprep.mubr.f32.mxu0 %v126_v22  ;;  %v973_v56 = vld [vmem:[#allocation4 + $0x6a8] sm:$0xff] }
  0xb9   :  { %1364 = vmatprep.mubr.f32.mxu1 %v937_v21  ;;  %3241 = vmatpush1.bf16.msra.mxu1 %v3240_v24  ;;  %v972_v21 = vld [vmem:[#allocation4 + $0x6a0] sm:$0xff]  ;;  %v145_v22 = vld [vmem:[#allocation9 + $0x188] sm:$0xff] }
  0xba   :  { %3242 = vmatprep.subr.bf16.mxu1 %v3710_v0  ;;  %3214 = vmatpush1.bf16.msra.mxu0 %v3884_v17  ;;  %v952_v17 = vld [vmem:[#allocation4 + $0x600] sm:$0xff]  ;;  %v977_v24 = vld [vmem:[#allocation4 + $0x6c8] sm:$0xff] }
  0xbb   :  { %2960 = vmatmul.mubr.f32.gmra.mrb[30].mxu0 %v127_v27  ;;  %3215 = vmatprep.subr.bf16.mxu0 %v3710_v0  ;;  %v148_v27 = vld [vmem:[#allocation9 + $0x1a0] sm:$0xff] }
  0xbc   :  { %1365 = vmatmul.mubr.f32.gmra.mrb[16].mxu1 %v936_v61  ;;  %2962 = vmatprep.mubr.f32.mxu0 %v128_v29  ;;  %v981_v61 = vld [vmem:[#allocation4 + $0x6e8] sm:$0xff] }
  0xbd   :  { %1369 = vmatprep.mubr.f32.mxu1 %v941_v28  ;;  %3244 = vmatpush1.bf16.msra.mxu1 %v3243_v30  ;;  %v980_v28 = vld [vmem:[#allocation4 + $0x6e0] sm:$0xff]  ;;  %v149_v29 = vld [vmem:[#allocation9 + $0x1a8] sm:$0xff] }
  0xbe   :  { %3245 = vmatprep.subr.bf16.mxu1 %v3710_v0  ;;  %3217 = vmatpush1.bf16.msra.mxu0 %v3890_v23  ;;  %v137_v23 = vld [vmem:[#allocation9 + $0x148] sm:$0xff] }
  0xbf   :  { %2963 = vmatmul.mubr.f32.gmra.mrb[32].mxu0 %v129_v33  ;;  %v985_v30 = vld [vmem:[#allocation4 + $0x708] sm:$0xff] }
  0xc0   :  { %1370 = vmatmul.mubr.f32.gmra.mrb[18].mxu1 %v940_v3  ;;  %2965 = vmatprep.mubr.f32.mxu0 %v130_v35  ;;  %v151_v3 = vld [vmem:[#allocation9 + $0x1b8] sm:$0xff]  ;;  %v989_v33 = vld [vmem:[#allocation4 + $0x728] sm:$0xff]  ;;  %v988_v35 = vld [vmem:[#allocation4 + $0x720] sm:$0xff] }
  0xc1   :  { %1374 = vmatprep.mubr.f32.mxu1 %v945_v34  ;;  %3247 = vmatpush1.bf16.msra.mxu1 %v3246_v36  ;;  %v152_v34 = vld [vmem:[#allocation9 + $0x1c0] sm:$0xff]  ;;  %v153_v36 = vld [vmem:[#allocation9 + $0x1c8] sm:$0xff] }
  0xc2   :  { %3248 = vmatprep.subr.bf16.mxu1 %v3710_v0 }
  0xc3   :  { %2966 = vmatmul.mubr.f32.gmra.mrb[34].mxu0 %v131_v39  ;;  %v155_v39 = vld [vmem:[#allocation9 + $0x1d8] sm:$0xff] }
  0xc4   :  { %1375 = vmatmul.mubr.f32.gmra.mrb[20].mxu1 %v944_v4  ;;  %2968 = vmatprep.mubr.f32.mxu0 %v132_v41  ;;  %v992_v4 = vld [vmem:[#allocation4 + $0x740] sm:$0xff] }
  0xc5   :  { %1379 = vmatprep.mubr.f32.mxu1 %v949_v40  ;;  %3250 = vmatpush1.bf16.msra.mxu1 %v3249_v42  ;;  %v997_v40 = vld [vmem:[#allocation4 + $0x768] sm:$0xff]  ;;  %v156_v41 = vld [vmem:[#allocation9 + $0x1e0] sm:$0xff] }
  0xc6   :  { %3251 = vmatprep.subr.bf16.mxu1 %v3710_v0  ;;  %v996_v42 = vld [vmem:[#allocation4 + $0x760] sm:$0xff] }
  0xc7   :  { %2969 = vmatmul.mubr.f32.gmra.mrb[36].mxu0 %v133_v45  ;;  %v1000_v45 = vld [vmem:[#allocation4 + $0x780] sm:$0xff] }
  0xc8   :  { %1380 = vmatmul.mubr.f32.gmra.mrb[22].mxu1 %v948_v7  ;;  %2971 = vmatprep.mubr.f32.mxu0 %v134_v47  ;;  %v158_v7 = vld [vmem:[#allocation9 + $0x1f0] sm:$0xff]  ;;  %v1005_v47 = vld [vmem:[#allocation4 + $0x7a8] sm:$0xff] }
  0xc9   :  { %1384 = vmatprep.mubr.f32.mxu1 %v953_v46  ;;  %3253 = vmatpush1.bf16.msra.mxu1 %v3252_v48  ;;  %v159_v46 = vld [vmem:[#allocation9 + $0x1f8] sm:$0xff]  ;;  %v761_v48 = vld [vmem:[#allocation4 + $0x8] sm:$0xff] }
  0xca   :  { %3254 = vmatprep.subr.bf16.mxu1 %v3710_v0 }
  0xcb   :  { %2972 = vmatmul.mubr.f32.gmra.mrb[38].mxu0 %v135_v51  ;;  %v765_v51 = vld [vmem:[#allocation4 + $0x28] sm:$0xff] }
  0xcc   :  { %1385 = vmatmul.mubr.f32.gmra.mrb[24].mxu1 %v952_v17  ;;  %2974 = vmatprep.mubr.f32.mxu0 %v136_v54  ;;  %v1009_v17 = vld [vmem:[#allocation4 + $0x7c8] sm:$0xff]  ;;  %v764_v54 = vld [vmem:[#allocation4 + $0x20] sm:$0xff] }
  0xcd   :  { %1389 = vmatprep.mubr.f32.mxu1 %v957_v52  ;;  %3256 = vmatpush1.bf16.msra.mxu1 %v3255_v55  ;;  %v1008_v52 = vld [vmem:[#allocation4 + $0x7c0] sm:$0xff]  ;;  %v1013_v55 = vld [vmem:[#allocation4 + $0x7e8] sm:$0xff] }
  0xce   :  { %3257 = vmatprep.subr.bf16.mxu1 %v3710_v0 }
  0xcf   :  { %2975 = vmatmul.mubr.f32.gmra.mrb[40].mxu0 %v137_v23  ;;  %v763_v23 = vld [vmem:[#allocation4 + $0x18] sm:$0xff] }
  0xd0   :  { %1390 = vmatmul.mubr.f32.gmra.mrb[26].mxu1 %v956_v59  ;;  %2977 = vmatprep.mubr.f32.mxu0 %v138_v62  ;;  %v768_v59 = vld [vmem:[#allocation4 + $0x40] sm:$0xff]  ;;  %v762_v62 = vld [vmem:[#allocation4 + $0x10] sm:$0xff] }
  0xd1   :  { %1394 = vmatprep.mubr.f32.mxu1 %v961_v60  ;;  %3259 = vmatpush1.bf16.msra.mxu1 %v3258_v63  ;;  %v773_v60 = vld [vmem:[#allocation4 + $0x68] sm:$0xff]  ;;  %v772_v63 = vld [vmem:[#allocation4 + $0x60] sm:$0xff] }
  0xd2   :  { %3260 = vmatprep.subr.bf16.mxu1 %v3710_v0 }
  0xd3   :  { %2978 = vmatmul.mubr.f32.gmra.mrb[42].mxu0 %v139_v5  ;;  %v776_v5 = vld [vmem:[#allocation4 + $0x80] sm:$0xff] }
  0xd4   :  { %1395 = vmatmul.mubr.f32.gmra.mrb[28].mxu1 %v960_v53  ;;  %2980 = vmatprep.mubr.f32.mxu0 %v140_v8  ;;  %v766_v53 = vld [vmem:[#allocation4 + $0x30] sm:$0xff]  ;;  %v781_v8 = vld [vmem:[#allocation4 + $0xa8] sm:$0xff] }
  0xd5   :  { %1399 = vmatprep.mubr.f32.mxu1 %v965_v6  ;;  %3262 = vmatpush1.bf16.msra.mxu1 %v3261_v9  ;;  %v771_v6 = vld [vmem:[#allocation4 + $0x58] sm:$0xff]  ;;  %v770_v9 = vld [vmem:[#allocation4 + $0x50] sm:$0xff] }
  0xd6   :  { %3263 = vmatprep.subr.bf16.mxu1 %v3710_v0  ;;  %v976_v0 = vld [vmem:[#allocation4 + $0x6c0] sm:$0xff] }
  0xd7   :  { %2981 = vmatmul.mubr.f32.gmra.mrb[44].mxu0 %v141_v13  ;;  %v774_v13 = vld [vmem:[#allocation4 + $0x70] sm:$0xff] }
  0xd8   :  { %1400 = vmatmul.mubr.f32.gmra.mrb[30].mxu1 %v964_v12  ;;  %2983 = vmatprep.mubr.f32.mxu0 %v142_v15  ;;  %v785_v12 = vld [vmem:[#allocation4 + $0xc8] sm:$0xff]  ;;  %v779_v15 = vld [vmem:[#allocation4 + $0x98] sm:$0xff] }
  0xd9   :  { %1404 = vmatprep.mubr.f32.mxu1 %v969_v14  ;;  %3265 = vmatpush1.bf16.msra.mxu1 %v3264_v16  ;;  %v784_v14 = vld [vmem:[#allocation4 + $0xc0] sm:$0xff]  ;;  %v789_v16 = vld [vmem:[#allocation4 + $0xe8] sm:$0xff] }
  0xdb   :  { %2984 = vmatmul.mubr.f32.gmra.mrb[46].mxu0 %v143_v19  ;;  %v788_v19 = vld [vmem:[#allocation4 + $0xe0] sm:$0xff] }
  0xdc   :  { %1405 = vmatmul.mubr.f32.gmra.mrb[32].mxu1 %v968_v18  ;;  %2986 = vmatprep.mubr.f32.mxu0 %v144_v20  ;;  %v778_v18 = vld [vmem:[#allocation4 + $0x90] sm:$0xff]  ;;  %v793_v20 = vld [vmem:[#allocation4 + $0x108] sm:$0xff] }
  0xdd   :  { %1409 = vmatprep.mubr.f32.mxu1 %v973_v56  ;;  %v783_v56 = vld [vmem:[#allocation4 + $0xb8] sm:$0xff] }
  0xdf   :  { %2987 = vmatmul.mubr.f32.gmra.mrb[48].mxu0 %v145_v22  ;;  %v792_v22 = vld [vmem:[#allocation4 + $0x100] sm:$0xff] }
  0xe0   :  { %1410 = vmatmul.mubr.f32.gmra.mrb[34].mxu1 %v972_v21  ;;  %2989 = vmatprep.mubr.f32.mxu0 %v146_v25  ;;  %v782_v21 = vld [vmem:[#allocation4 + $0xb0] sm:$0xff]  ;;  %v797_v25 = vld [vmem:[#allocation4 + $0x128] sm:$0xff] }
  0xe1   :  { %1414 = vmatprep.mubr.f32.mxu1 %v977_v24  ;;  %v787_v24 = vld [vmem:[#allocation4 + $0xd8] sm:$0xff] }
  0xe3   :  { %2990 = vmatmul.mubr.f32.gmra.mrb[50].mxu0 %v147_v26  ;;  %v796_v26 = vld [vmem:[#allocation4 + $0x120] sm:$0xff] }
  0xe4   :  { %1415 = vmatmul.mubr.f32.gmra.mrb[36].mxu1 %v976_v0  ;;  %2992 = vmatprep.mubr.f32.mxu0 %v148_v27  ;;  %v786_v0 = vld [vmem:[#allocation4 + $0xd0] sm:$0xff]  ;;  %v801_v27 = vld [vmem:[#allocation4 + $0x148] sm:$0xff] }
  0xe5   :  { %1419 = vmatprep.mubr.f32.mxu1 %v981_v61  ;;  %v791_v61 = vld [vmem:[#allocation4 + $0xf8] sm:$0xff] }
  0xe7   :  { %2993 = vmatmul.mubr.f32.gmra.mrb[52].mxu0 %v149_v29  ;;  %v800_v29 = vld [vmem:[#allocation4 + $0x140] sm:$0xff] }
  0xe8   :  { %1420 = vmatmul.mubr.f32.gmra.mrb[38].mxu1 %v980_v28  ;;  %2995 = vmatprep.mubr.f32.mxu0 %v150_v31  ;;  %v790_v28 = vld [vmem:[#allocation4 + $0xf0] sm:$0xff]  ;;  %v805_v31 = vld [vmem:[#allocation4 + $0x168] sm:$0xff] }
  0xe9   :  { %1424 = vmatprep.mubr.f32.mxu1 %v985_v30  ;;  %v795_v30 = vld [vmem:[#allocation4 + $0x118] sm:$0xff] }
  0xeb   :  { %2996 = vmatmul.mubr.f32.gmra.mrb[54].mxu0 %v151_v3  ;;  %v804_v3 = vld [vmem:[#allocation4 + $0x160] sm:$0xff] }
  0xec   :  { %1425 = vmatmul.mubr.f32.gmra.mrb[40].mxu1 %v984_v32  ;;  %2998 = vmatprep.mubr.f32.mxu0 %v152_v34  ;;  %v794_v32 = vld [vmem:[#allocation4 + $0x110] sm:$0xff]  ;;  %v809_v34 = vld [vmem:[#allocation4 + $0x188] sm:$0xff] }
  0xed   :  { %1429 = vmatprep.mubr.f32.mxu1 %v989_v33  ;;  %v799_v33 = vld [vmem:[#allocation4 + $0x138] sm:$0xff] }
  0xef   :  { %2999 = vmatmul.mubr.f32.gmra.mrb[56].mxu0 %v153_v36  ;;  %v808_v36 = vld [vmem:[#allocation4 + $0x180] sm:$0xff] }
  0xf0   :  { %1430 = vmatmul.mubr.f32.gmra.mrb[42].mxu1 %v988_v35  ;;  %3001 = vmatprep.mubr.f32.mxu0 %v154_v38  ;;  %v798_v35 = vld [vmem:[#allocation4 + $0x130] sm:$0xff]  ;;  %v813_v38 = vld [vmem:[#allocation4 + $0x1a8] sm:$0xff] }
  0xf1   :  { %1434 = vmatprep.mubr.f32.mxu1 %v993_v37  ;;  %v803_v37 = vld [vmem:[#allocation4 + $0x158] sm:$0xff] }
  0xf3   :  { %3002 = vmatmul.mubr.f32.gmra.mrb[58].mxu0 %v155_v39  ;;  %v812_v39 = vld [vmem:[#allocation4 + $0x1a0] sm:$0xff] }
  0xf4   :  { %1435 = vmatmul.mubr.f32.gmra.mrb[44].mxu1 %v992_v4  ;;  %3004 = vmatprep.mubr.f32.mxu0 %v156_v41  ;;  %v802_v4 = vld [vmem:[#allocation4 + $0x150] sm:$0xff]  ;;  %v817_v41 = vld [vmem:[#allocation4 + $0x1c8] sm:$0xff] }
  0xf5   :  { %1439 = vmatprep.mubr.f32.mxu1 %v997_v40  ;;  %v807_v40 = vld [vmem:[#allocation4 + $0x178] sm:$0xff] }
  0xf7   :  { %3005 = vmatmul.mubr.f32.gmra.mrb[60].mxu0 %v157_v43  ;;  %v816_v43 = vld [vmem:[#allocation4 + $0x1c0] sm:$0xff] }
  0xf8   :  { %1440 = vmatmul.mubr.f32.gmra.mrb[46].mxu1 %v996_v42  ;;  %3007 = vmatprep.mubr.f32.mxu0 %v158_v7  ;;  %v806_v42 = vld [vmem:[#allocation4 + $0x170] sm:$0xff]  ;;  %v821_v7 = vld [vmem:[#allocation4 + $0x1e8] sm:$0xff] }
  0xf9   :  { %1444 = vmatprep.mubr.f32.mxu1 %v1001_v44  ;;  %v811_v44 = vld [vmem:[#allocation4 + $0x198] sm:$0xff] }
  0xfb   :  { %3008 = vmatmul.mubr.f32.gmra.mrb[62].mxu0 %v159_v46  ;;  %v820_v46 = vld [vmem:[#allocation4 + $0x1e0] sm:$0xff] }
  0xfc   :  { %1445 = vmatmul.mubr.f32.gmra.mrb[48].mxu1 %v1000_v45  ;;  %1144 = vmatprep.mubr.f32.mxu0 %v761_v48  ;;  %v810_v45 = vld [vmem:[#allocation4 + $0x190] sm:$0xff]  ;;  %v825_v48 = vld [vmem:[#allocation4 + $0x208] sm:$0xff] }
  0xfd   :  { %1449 = vmatprep.mubr.f32.mxu1 %v1005_v47  ;;  %v815_v47 = vld [vmem:[#allocation4 + $0x1b8] sm:$0xff] }
  0xff   :  { %1145 = vmatmul.mubr.f32.vlgmr.msra.gmra.mrb[64].mxu0 %v760_v50  ;;  %v824_v50 = vld [vmem:[#allocation4 + $0x200] sm:$0xff] }
 0x100   :  { %1450 = vmatmul.mubr.f32.gmra.mrb[50].mxu1 %v1004_v49  ;;  %1149 = vmatprep.mubr.f32.mxu0 %v765_v51  ;;  %v814_v49 = vld [vmem:[#allocation4 + $0x1b0] sm:$0xff]  ;;  %v829_v51 = vld [vmem:[#allocation4 + $0x228] sm:$0xff] }
 0x101   :  { %1454 = vmatprep.mubr.f32.mxu1 %v1009_v17  ;;  %v819_v17 = vld [vmem:[#allocation4 + $0x1d8] sm:$0xff] }
 0x103   :  { %1150 = vmatmul.mubr.f32.gmra.mrb[66].mxu0 %v764_v54  ;;  %v828_v54 = vld [vmem:[#allocation4 + $0x220] sm:$0xff] }
 0x104   :  { %1455 = vmatmul.mubr.f32.gmra.mrb[52].mxu1 %v1008_v52  ;;  %1154 = vmatprep.mubr.f32.mxu0 %v769_v57  ;;  %v818_v52 = vld [vmem:[#allocation4 + $0x1d0] sm:$0xff]  ;;  %v833_v57 = vld [vmem:[#allocation4 + $0x248] sm:$0xff] }
 0x105   :  { %1459 = vmatprep.mubr.f32.mxu1 %v1013_v55  ;;  %v823_v55 = vld [vmem:[#allocation4 + $0x1f8] sm:$0xff] }
 0x107   :  { %1155 = vmatmul.mubr.f32.gmra.mrb[68].mxu0 %v768_v59  ;;  %v2110_v59 = vld [vmem:[#allocation10 + $0x8] sm:$0xff] }
 0x108   :  { %1460 = vmatmul.mubr.f32.gmra.mrb[54].mxu1 %v1012_v58  ;;  %1159 = vmatprep.mubr.f32.mxu0 %v773_v60  ;;  %v2109_v58 = vld [vmem:[#allocation10] sm:$0xff]  ;;  %v822_v60 = vld [vmem:[#allocation4 + $0x1f0] sm:$0xff] }
 0x109   :  { %1529 = vmatprep.mubr.f32.mxu1 %v763_v23  ;;  %v3266_v23 = vpack.c.bf16 %v2110_v59, %v2109_v58  ;;  %v862_v58 = vld [vmem:[#allocation4 + $0x330] sm:$0xff]  ;;  %v872_v59 = vld [vmem:[#allocation4 + $0x380] sm:$0xff] }
 0x10b   :  { %1160 = vmatmul.mubr.f32.gmra.mrb[70].mxu0 %v772_v63  ;;  %v827_v63 = vld [vmem:[#allocation4 + $0x218] sm:$0xff]  ;;  %3267 = vmatprep.subr.bf16.mxu0 %v3266_v23 }
 0x10c   :  { %1530 = vmatmul.mubr.f32.vlgmr.msra.gmra.mrb[56].mxu1 %v762_v62  ;;  %1164 = vmatprep.mubr.f32.mxu0 %v777_v2  ;;  %v832_v62 = vld [vmem:[#allocation4 + $0x240] sm:$0xff]  ;;  %v2111_v2 = vld [vmem:[#allocation10 + $0x10] sm:$0xff] }
 0x10d   :  { %1534 = vmatprep.mubr.f32.mxu1 %v767_v1  ;;  %v837_v1 = vld [vmem:[#allocation4 + $0x268] sm:$0xff]  ;;  %3269 = vmatpush3.bf16.msra.mxu0 %v3266_v23  ;;  %v867_v23 = vld [vmem:[#allocation4 + $0x358] sm:$0xff] }
 0x10f   :  { %1165 = vmatmul.mubr.f32.gmra.mrb[72].mxu0 %v776_v5 }
 0x110   :  { %1535 = vmatmul.mubr.f32.gmra.mrb[58].mxu1 %v766_v53  ;;  %1169 = vmatprep.mubr.f32.mxu0 %v781_v8  ;;  %v2112_v53 = vld [vmem:[#allocation10 + $0x18] sm:$0xff]  ;;  %v836_v8 = vld [vmem:[#allocation4 + $0x260] sm:$0xff] }
 0x111   :  { %1539 = vmatprep.mubr.f32.mxu1 %v771_v6  ;;  %v3270_v5 = vpack.c.bf16 %v2112_v53, %v2111_v2  ;;  %v826_v6 = vld [vmem:[#allocation4 + $0x210] sm:$0xff]  ;;  %v881_v2 = vld [vmem:[#allocation4 + $0x3c8] sm:$0xff] }
 0x112   :  { %v870_v53 = vld [vmem:[#allocation4 + $0x370] sm:$0xff] }
 0x113   :  { %1170 = vmatmul.mubr.f32.gmra.mrb[74].mxu0 %v780_v10  ;;  %v841_v10 = vld [vmem:[#allocation4 + $0x288] sm:$0xff]  ;;  %3271 = vmatprep.subr.bf16.mxu0 %v3270_v5 }
 0x114   :  { %1540 = vmatmul.mubr.f32.gmra.mrb[60].mxu1 %v770_v9  ;;  %1174 = vmatprep.mubr.f32.mxu0 %v785_v12  ;;  %v831_v9 = vld [vmem:[#allocation4 + $0x238] sm:$0xff]  ;;  %v2114_v12 = vld [vmem:[#allocation10 + $0x28] sm:$0xff] }
 0x115   :  { %1544 = vmatprep.mubr.f32.mxu1 %v775_v11  ;;  %3273 = vmatpush3.bf16.msra.mxu0 %v3270_v5  ;;  %v2113_v11 = vld [vmem:[#allocation10 + $0x20] sm:$0xff] }
 0x116   :  { %v880_v5 = vld [vmem:[#allocation4 + $0x3c0] sm:$0xff] }
 0x117   :  { %1175 = vmatmul.mubr.f32.gmra.mrb[76].mxu0 %v784_v14  ;;  %v830_v14 = vld [vmem:[#allocation4 + $0x230] sm:$0xff] }
 0x118   :  { %1545 = vmatmul.mubr.f32.gmra.mrb[62].mxu1 %v774_v13  ;;  %1179 = vmatprep.mubr.f32.mxu0 %v789_v16  ;;  %v3274_v13 = vpack.c.bf16 %v2114_v12, %v2113_v11  ;;  %v835_v16 = vld [vmem:[#allocation4 + $0x258] sm:$0xff]  ;;  %v889_v12 = vld [vmem:[#allocation4 + $0x408] sm:$0xff] }
 0x119   :  { %1549 = vmatprep.mubr.f32.mxu1 %v779_v15  ;;  %v840_v15 = vld [vmem:[#allocation4 + $0x280] sm:$0xff]  ;;  %v879_v11 = vld [vmem:[#allocation4 + $0x3b8] sm:$0xff] }
 0x11a   :  { %3275 = vmatprep.subr.bf16.mxu0 %v3274_v13 }
 0x11b   :  { %1180 = vmatmul.mubr.f32.gmra.mrb[78].mxu0 %v788_v19  ;;  %v2115_v19 = vld [vmem:[#allocation10 + $0x30] sm:$0xff] }
 0x11c   :  { %1550 = vmatmul.mubr.f32.gmra.mrb[64].mxu1 %v778_v18  ;;  %1184 = vmatprep.mubr.f32.mxu0 %v793_v20  ;;  %v845_v18 = vld [vmem:[#allocation4 + $0x2a8] sm:$0xff] }
 0x11d   :  { %1554 = vmatprep.mubr.f32.mxu1 %v783_v56  ;;  %3277 = vmatpush3.bf16.msra.mxu0 %v3274_v13  ;;  %v2116_v56 = vld [vmem:[#allocation10 + $0x38] sm:$0xff]  ;;  %v878_v13 = vld [vmem:[#allocation4 + $0x3b0] sm:$0xff] }
 0x11e   :  { %v3278_v20 = vpack.c.bf16 %v2116_v56, %v2115_v19  ;;  %v892_v19 = vld [vmem:[#allocation4 + $0x420] sm:$0xff]  ;;  %v887_v56 = vld [vmem:[#allocation4 + $0x3f8] sm:$0xff] }
 0x11f   :  { %1185 = vmatmul.mubr.f32.gmra.mrb[80].mxu0 %v792_v22  ;;  %v844_v22 = vld [vmem:[#allocation4 + $0x2a0] sm:$0xff] }
 0x120   :  { %1555 = vmatmul.mubr.f32.gmra.mrb[66].mxu1 %v782_v21  ;;  %1189 = vmatprep.mubr.f32.mxu0 %v797_v25  ;;  %v834_v21 = vld [vmem:[#allocation4 + $0x250] sm:$0xff]  ;;  %v849_v25 = vld [vmem:[#allocation4 + $0x2c8] sm:$0xff] }
 0x121   :  { %1559 = vmatprep.mubr.f32.mxu1 %v787_v24  ;;  %v839_v24 = vld [vmem:[#allocation4 + $0x278] sm:$0xff]  ;;  %3279 = vmatprep.subr.bf16.mxu0 %v3278_v20 }
 0x122   :  { %3281 = vmatpush3.bf16.msra.mxu0 %v3278_v20  ;;  %v897_v20 = vld [vmem:[#allocation4 + $0x448] sm:$0xff] }
 0x123   :  { %1190 = vmatmul.mubr.f32.gmra.mrb[82].mxu0 %v796_v26  ;;  %v2118_v26 = vld [vmem:[#allocation10 + $0x48] sm:$0xff] }
 0x124   :  { %1560 = vmatmul.mubr.f32.gmra.mrb[68].mxu1 %v786_v0  ;;  %1194 = vmatprep.mubr.f32.mxu0 %v801_v27  ;;  %v2117_v0 = vld [vmem:[#allocation10 + $0x40] sm:$0xff]  ;;  %v838_v27 = vld [vmem:[#allocation4 + $0x270] sm:$0xff] }
 0x125   :  { %1564 = vmatprep.mubr.f32.mxu1 %v791_v61  ;;  %v3282_v61 = vpack.c.bf16 %v2118_v26, %v2117_v0  ;;  %v890_v0 = vld [vmem:[#allocation4 + $0x410] sm:$0xff]  ;;  %v900_v26 = vld [vmem:[#allocation4 + $0x460] sm:$0xff] }
 0x127   :  { %1195 = vmatmul.mubr.f32.gmra.mrb[84].mxu0 %v800_v29  ;;  %v843_v29 = vld [vmem:[#allocation4 + $0x298] sm:$0xff]  ;;  %3283 = vmatprep.subr.bf16.mxu0 %v3282_v61 }
 0x128   :  { %1565 = vmatmul.mubr.f32.gmra.mrb[70].mxu1 %v790_v28  ;;  %1199 = vmatprep.mubr.f32.mxu0 %v805_v31  ;;  %v848_v28 = vld [vmem:[#allocation4 + $0x2c0] sm:$0xff]  ;;  %v2119_v31 = vld [vmem:[#allocation10 + $0x50] sm:$0xff] }
 0x129   :  { %1569 = vmatprep.mubr.f32.mxu1 %v795_v30  ;;  %v853_v30 = vld [vmem:[#allocation4 + $0x2e8] sm:$0xff]  ;;  %3285 = vmatpush3.bf16.msra.mxu0 %v3282_v61  ;;  %v895_v61 = vld [vmem:[#allocation4 + $0x438] sm:$0xff] }
 0x12b   :  { %1200 = vmatmul.mubr.f32.gmra.mrb[86].mxu0 %v804_v3 }
 0x12c   :  { %1570 = vmatmul.mubr.f32.gmra.mrb[72].mxu1 %v794_v32  ;;  %1204 = vmatprep.mubr.f32.mxu0 %v809_v34  ;;  %v2120_v32 = vld [vmem:[#allocation10 + $0x58] sm:$0xff]  ;;  %v852_v34 = vld [vmem:[#allocation4 + $0x2e0] sm:$0xff] }
 0x12d   :  { %1574 = vmatprep.mubr.f32.mxu1 %v799_v33  ;;  %v3286_v3 = vpack.c.bf16 %v2120_v32, %v2119_v31  ;;  %v842_v33 = vld [vmem:[#allocation4 + $0x290] sm:$0xff]  ;;  %v907_v32 = vld [vmem:[#allocation4 + $0x498] sm:$0xff] }
 0x12e   :  { %v902_v31 = vld [vmem:[#allocation4 + $0x470] sm:$0xff] }
 0x12f   :  { %1205 = vmatmul.mubr.f32.gmra.mrb[88].mxu0 %v808_v36  ;;  %v857_v36 = vld [vmem:[#allocation4 + $0x308] sm:$0xff]  ;;  %3287 = vmatprep.subr.bf16.mxu0 %v3286_v3 }
 0x130   :  { %1575 = vmatmul.mubr.f32.gmra.mrb[74].mxu1 %v798_v35  ;;  %1209 = vmatprep.mubr.f32.mxu0 %v813_v38  ;;  %v847_v35 = vld [vmem:[#allocation4 + $0x2b8] sm:$0xff]  ;;  %v2122_v38 = vld [vmem:[#allocation10 + $0x68] sm:$0xff] }
 0x131   :  { %1579 = vmatprep.mubr.f32.mxu1 %v803_v37  ;;  %3289 = vmatpush3.bf16.msra.mxu0 %v3286_v3  ;;  %v2121_v37 = vld [vmem:[#allocation10 + $0x60] sm:$0xff]  ;;  %v906_v3 = vld [vmem:[#allocation4 + $0x490] sm:$0xff] }
 0x133   :  { %1210 = vmatmul.mubr.f32.gmra.mrb[90].mxu0 %v812_v39  ;;  %v846_v39 = vld [vmem:[#allocation4 + $0x2b0] sm:$0xff] }
 0x134   :  { %1580 = vmatmul.mubr.f32.gmra.mrb[76].mxu1 %v802_v4  ;;  %1214 = vmatprep.mubr.f32.mxu0 %v817_v41  ;;  %v3290_v4 = vpack.c.bf16 %v2122_v38, %v2121_v37  ;;  %v851_v41 = vld [vmem:[#allocation4 + $0x2d8] sm:$0xff]  ;;  %v918_v38 = vld [vmem:[#allocation4 + $0x4f0] sm:$0xff] }
 0x135   :  { %1584 = vmatprep.mubr.f32.mxu1 %v807_v40  ;;  %v856_v40 = vld [vmem:[#allocation4 + $0x300] sm:$0xff]  ;;  %v919_v37 = vld [vmem:[#allocation4 + $0x4f8] sm:$0xff] }
 0x136   :  { %3291 = vmatprep.subr.bf16.mxu0 %v3290_v4 }
 0x137   :  { %1215 = vmatmul.mubr.f32.gmra.mrb[92].mxu0 %v816_v43  ;;  %v2123_v43 = vld [vmem:[#allocation10 + $0x70] sm:$0xff] }
 0x138   :  { %1585 = vmatmul.mubr.f32.gmra.mrb[78].mxu1 %v806_v42  ;;  %1219 = vmatprep.mubr.f32.mxu0 %v821_v7  ;;  %v861_v42 = vld [vmem:[#allocation4 + $0x328] sm:$0xff] }
 0x139   :  { %1589 = vmatprep.mubr.f32.mxu1 %v811_v44  ;;  %3293 = vmatpush3.bf16.msra.mxu0 %v3290_v4  ;;  %v2124_v44 = vld [vmem:[#allocation10 + $0x78] sm:$0xff] }
 0x13a   :  { %v3294_v7 = vpack.c.bf16 %v2124_v44, %v2123_v43  ;;  %v923_v4 = vld [vmem:[#allocation4 + $0x518] sm:$0xff]  ;;  %v930_v43 = vld [vmem:[#allocation4 + $0x550] sm:$0xff] }
 0x13b   :  { %1220 = vmatmul.mubr.f32.gmra.mrb[94].mxu0 %v820_v46  ;;  %v860_v46 = vld [vmem:[#allocation4 + $0x320] sm:$0xff]  ;;  %v935_v44 = vld [vmem:[#allocation4 + $0x578] sm:$0xff] }
 0x13c   :  { %1590 = vmatmul.mubr.f32.gmra.mrb[80].mxu1 %v810_v45  ;;  %1224 = vmatprep.mubr.f32.mxu0 %v825_v48  ;;  %v850_v45 = vld [vmem:[#allocation4 + $0x2d0] sm:$0xff]  ;;  %v865_v48 = vld [vmem:[#allocation4 + $0x348] sm:$0xff] }
 0x13d   :  { %1594 = vmatprep.mubr.f32.mxu1 %v815_v47  ;;  %v855_v47 = vld [vmem:[#allocation4 + $0x2f8] sm:$0xff]  ;;  %3295 = vmatprep.subr.bf16.mxu0 %v3294_v7 }
 0x13e   :  { %3297 = vmatpush3.bf16.msra.mxu0 %v3294_v7  ;;  %v934_v7 = vld [vmem:[#allocation4 + $0x570] sm:$0xff] }
 0x13f   :  { %1225 = vmatmul.mubr.f32.gmra.mrb[96].mxu0 %v824_v50  ;;  %v864_v50 = vld [vmem:[#allocation4 + $0x340] sm:$0xff] }
 0x140   :  { %1595 = vmatmul.mubr.f32.gmra.mrb[82].mxu1 %v814_v49  ;;  %1229 = vmatprep.mubr.f32.mxu0 %v829_v51  ;;  %v854_v49 = vld [vmem:[#allocation4 + $0x2f0] sm:$0xff]  ;;  %v869_v51 = vld [vmem:[#allocation4 + $0x368] sm:$0xff] }
 0x141   :  { %1599 = vmatprep.mubr.f32.mxu1 %v819_v17  ;;  %v859_v17 = vld [vmem:[#allocation4 + $0x318] sm:$0xff] }
 0x143   :  { %1230 = vmatmul.mubr.f32.gmra.mrb[98].mxu0 %v828_v54  ;;  %v868_v54 = vld [vmem:[#allocation4 + $0x360] sm:$0xff] }
 0x144   :  { %1600 = vmatmul.mubr.f32.gmra.mrb[84].mxu1 %v818_v52  ;;  %1234 = vmatprep.mubr.f32.mxu0 %v833_v57  ;;  %v858_v52 = vld [vmem:[#allocation4 + $0x310] sm:$0xff]  ;;  %v873_v57 = vld [vmem:[#allocation4 + $0x388] sm:$0xff] }
 0x145   :  { %1604 = vmatprep.mubr.f32.mxu1 %v823_v55  ;;  %v863_v55 = vld [vmem:[#allocation4 + $0x338] sm:$0xff] }
 0x147   :  { %1235 = vmatmul.mubr.f32.gmra.mrb[100].mxu0 %v832_v62  ;;  %v866_v62 = vld [vmem:[#allocation4 + $0x350] sm:$0xff] }
 0x148   :  { %1605 = vmatmul.mubr.f32.gmra.mrb[86].mxu1 %v822_v60  ;;  %1239 = vmatprep.mubr.f32.mxu0 %v837_v1  ;;  %v877_v60 = vld [vmem:[#allocation4 + $0x3a8] sm:$0xff]  ;;  %v871_v1 = vld [vmem:[#allocation4 + $0x378] sm:$0xff] }
 0x149   :  { %1609 = vmatprep.mubr.f32.mxu1 %v827_v63  ;;  %v876_v63 = vld [vmem:[#allocation4 + $0x3a0] sm:$0xff] }
 0x14b   :  { %1240 = vmatmul.mubr.f32.gmra.mrb[102].mxu0 %v836_v8  ;;  %v885_v8 = vld [vmem:[#allocation4 + $0x3e8] sm:$0xff] }
 0x14c   :  { %1610 = vmatmul.mubr.f32.gmra.mrb[88].mxu1 %v826_v6  ;;  %1244 = vmatprep.mubr.f32.mxu0 %v841_v10  ;;  %v875_v6 = vld [vmem:[#allocation4 + $0x398] sm:$0xff]  ;;  %v884_v10 = vld [vmem:[#allocation4 + $0x3e0] sm:$0xff] }
 0x14d   :  { %1614 = vmatprep.mubr.f32.mxu1 %v831_v9  ;;  %v874_v9 = vld [vmem:[#allocation4 + $0x390] sm:$0xff] }
 0x14f   :  { %1245 = vmatmul.mubr.f32.gmra.mrb[104].mxu0 %v840_v15  ;;  %v883_v15 = vld [vmem:[#allocation4 + $0x3d8] sm:$0xff] }
 0x150   :  { %1615 = vmatmul.mubr.f32.gmra.mrb[90].mxu1 %v830_v14  ;;  %1249 = vmatprep.mubr.f32.mxu0 %v845_v18  ;;  %v888_v14 = vld [vmem:[#allocation4 + $0x400] sm:$0xff]  ;;  %v882_v18 = vld [vmem:[#allocation4 + $0x3d0] sm:$0xff] }
 0x151   :  { %1619 = vmatprep.mubr.f32.mxu1 %v835_v16  ;;  %v893_v16 = vld [vmem:[#allocation4 + $0x428] sm:$0xff] }
 0x153   :  { %1250 = vmatmul.mubr.f32.gmra.mrb[106].mxu0 %v844_v22  ;;  %v896_v22 = vld [vmem:[#allocation4 + $0x440] sm:$0xff] }
 0x154   :  { %1620 = vmatmul.mubr.f32.gmra.mrb[92].mxu1 %v834_v21  ;;  %1254 = vmatprep.mubr.f32.mxu0 %v849_v25  ;;  %v886_v21 = vld [vmem:[#allocation4 + $0x3f0] sm:$0xff]  ;;  %v901_v25 = vld [vmem:[#allocation4 + $0x468] sm:$0xff] }
 0x155   :  { %1624 = vmatprep.mubr.f32.mxu1 %v839_v24  ;;  %v891_v24 = vld [vmem:[#allocation4 + $0x418] sm:$0xff] }
 0x157   :  { %1255 = vmatmul.mubr.f32.gmra.mrb[108].mxu0 %v848_v28  ;;  %v899_v28 = vld [vmem:[#allocation4 + $0x458] sm:$0xff] }
 0x158   :  { %1625 = vmatmul.mubr.f32.gmra.mrb[94].mxu1 %v838_v27  ;;  %1259 = vmatprep.mubr.f32.mxu0 %v853_v30  ;;  %v894_v27 = vld [vmem:[#allocation4 + $0x430] sm:$0xff]  ;;  %v903_v30 = vld [vmem:[#allocation4 + $0x478] sm:$0xff] }
 0x159   :  { %1629 = vmatprep.mubr.f32.mxu1 %v843_v29  ;;  %v898_v29 = vld [vmem:[#allocation4 + $0x450] sm:$0xff] }
 0x15b   :  { %1260 = vmatmul.mubr.f32.gmra.mrb[110].mxu0 %v852_v34  ;;  %v910_v34 = vld [vmem:[#allocation4 + $0x4b0] sm:$0xff] }
 0x15c   :  { %1630 = vmatmul.mubr.f32.gmra.mrb[96].mxu1 %v842_v33  ;;  %1264 = vmatprep.mubr.f32.mxu0 %v857_v36  ;;  %v911_v33 = vld [vmem:[#allocation4 + $0x4b8] sm:$0xff]  ;;  %v914_v36 = vld [vmem:[#allocation4 + $0x4d0] sm:$0xff] }
 0x15d   :  { %1634 = vmatprep.mubr.f32.mxu1 %v847_v35  ;;  %v915_v35 = vld [vmem:[#allocation4 + $0x4d8] sm:$0xff] }
 0x15f   :  { %1265 = vmatmul.mubr.f32.gmra.mrb[112].mxu0 %v856_v40  ;;  %v927_v40 = vld [vmem:[#allocation4 + $0x538] sm:$0xff] }
 0x160   :  { %1635 = vmatmul.mubr.f32.gmra.mrb[98].mxu1 %v846_v39  ;;  %1269 = vmatprep.mubr.f32.mxu0 %v861_v42  ;;  %v922_v39 = vld [vmem:[#allocation4 + $0x510] sm:$0xff]  ;;  %v931_v42 = vld [vmem:[#allocation4 + $0x558] sm:$0xff] }
 0x161   :  { %1639 = vmatprep.mubr.f32.mxu1 %v851_v41  ;;  %v926_v41 = vld [vmem:[#allocation4 + $0x530] sm:$0xff] }
 0x163   :  { %1270 = vmatmul.mubr.f32.gmra.mrb[114].mxu0 %v860_v46  ;;  %v938_v46 = vld [vmem:[#allocation4 + $0x590] sm:$0xff] }
 0x164   :  { %1640 = vmatmul.mubr.f32.gmra.mrb[100].mxu1 %v850_v45  ;;  %1274 = vmatprep.mubr.f32.mxu0 %v865_v48  ;;  %v939_v45 = vld [vmem:[#allocation4 + $0x598] sm:$0xff]  ;;  %v942_v48 = vld [vmem:[#allocation4 + $0x5b0] sm:$0xff] }
 0x165   :  { %1644 = vmatprep.mubr.f32.mxu1 %v855_v47  ;;  %v943_v47 = vld [vmem:[#allocation4 + $0x5b8] sm:$0xff] }
 0x167   :  { %1275 = vmatmul.mubr.f32.gmra.mrb[116].mxu0 %v864_v50  ;;  %v946_v50 = vld [vmem:[#allocation4 + $0x5d0] sm:$0xff] }
 0x168   :  { %1645 = vmatmul.mubr.f32.gmra.mrb[102].mxu1 %v854_v49  ;;  %1279 = vmatprep.mubr.f32.mxu0 %v869_v51  ;;  %v947_v49 = vld [vmem:[#allocation4 + $0x5d8] sm:$0xff]  ;;  %v950_v51 = vld [vmem:[#allocation4 + $0x5f0] sm:$0xff] }
 0x169   :  { %1649 = vmatprep.mubr.f32.mxu1 %v859_v17  ;;  %v951_v17 = vld [vmem:[#allocation4 + $0x5f8] sm:$0xff] }
 0x16b   :  { %1280 = vmatmul.mubr.f32.gmra.mrb[118].mxu0 %v868_v54  ;;  %v954_v54 = vld [vmem:[#allocation4 + $0x610] sm:$0xff] }
 0x16c   :  { %1650 = vmatmul.mubr.f32.gmra.mrb[104].mxu1 %v858_v52  ;;  %1284 = vmatprep.mubr.f32.mxu0 %v873_v57  ;;  %v955_v52 = vld [vmem:[#allocation4 + $0x618] sm:$0xff]  ;;  %v958_v57 = vld [vmem:[#allocation4 + $0x630] sm:$0xff] }
 0x16d   :  { %1654 = vmatprep.mubr.f32.mxu1 %v863_v55  ;;  %v959_v55 = vld [vmem:[#allocation4 + $0x638] sm:$0xff] }
 0x16f   :  { %1285 = vmatmul.mubr.f32.gmra.mrb[120].mxu0 %v872_v59  ;;  %v962_v59 = vld [vmem:[#allocation4 + $0x650] sm:$0xff] }
 0x170   :  { %1655 = vmatmul.mubr.f32.gmra.mrb[106].mxu1 %v862_v58  ;;  %1289 = vmatprep.mubr.f32.mxu0 %v877_v60  ;;  %v963_v58 = vld [vmem:[#allocation4 + $0x658] sm:$0xff] }
 0x171   :  { %1659 = vmatprep.mubr.f32.mxu1 %v867_v23  ;;  %v967_v23 = vld [vmem:[#allocation4 + $0x678] sm:$0xff] }
 0x173   :  { %1290 = vmatmul.mubr.f32.gmra.mrb[122].mxu0 %v876_v63  ;;  %v966_v63 = vld [vmem:[#allocation4 + $0x670] sm:$0xff] }
 0x174   :  { %1660 = vmatmul.mubr.f32.gmra.mrb[108].mxu1 %v866_v62  ;;  %1294 = vmatprep.mubr.f32.mxu0 %v881_v2 }
 0x175   :  { %1664 = vmatprep.mubr.f32.mxu1 %v871_v1  ;;  %v971_v1 = vld [vmem:[#allocation4 + $0x698] sm:$0xff] }
 0x177   :  { %1295 = vmatmul.mubr.f32.gmra.mrb[124].mxu0 %v880_v5  ;;  %v970_v5 = vld [vmem:[#allocation4 + $0x690] sm:$0xff] }
 0x178   :  { %1665 = vmatmul.mubr.f32.gmra.mrb[110].mxu1 %v870_v53  ;;  %1299 = vmatprep.mubr.f32.mxu0 %v885_v8 }
 0x179   :  { %1669 = vmatprep.mubr.f32.mxu1 %v875_v6  ;;  %v975_v6 = vld [vmem:[#allocation4 + $0x6b8] sm:$0xff] }
 0x17b   :  { %1300 = vmatmul.mubr.f32.gmra.mrb[126].mxu0 %v884_v10  ;;  %v974_v10 = vld [vmem:[#allocation4 + $0x6b0] sm:$0xff] }
 0x17c   :  { %1670 = vmatmul.mubr.f32.gmra.mrb[112].mxu1 %v874_v9  ;;  %1304 = vmatprep.mubr.f32.mxu0 %v889_v12 }
 0x17d   :  { %1674 = vmatprep.mubr.f32.mxu1 %v879_v11  ;;  %v979_v11 = vld [vmem:[#allocation4 + $0x6d8] sm:$0xff] }
 0x17f   :  { %1305 = vmatmul.mubr.f32.gmra.mrb[128].mxu0 %v888_v14 }
 0x180   :  { %1675 = vmatmul.mubr.f32.gmra.mrb[114].mxu1 %v878_v13  ;;  %1309 = vmatprep.mubr.f32.mxu0 %v893_v16 }
 0x181   :  { %1679 = vmatprep.mubr.f32.mxu1 %v883_v15 }
 0x183   :  { %1310 = vmatmul.mubr.f32.gmra.mrb[130].mxu0 %v892_v19  ;;  %v983_v19 = vld [vmem:[#allocation4 + $0x6f8] sm:$0xff] }
 0x184   :  { %1680 = vmatmul.mubr.f32.gmra.mrb[116].mxu1 %v882_v18  ;;  %1314 = vmatprep.mubr.f32.mxu0 %v897_v20  ;;  %v978_v18 = vld [vmem:[#allocation4 + $0x6d0] sm:$0xff] }
 0x185   :  { %1684 = vmatprep.mubr.f32.mxu1 %v887_v56 }
 0x187   :  { %1315 = vmatmul.mubr.f32.gmra.mrb[132].mxu0 %v896_v22 }
 0x188   :  { %1685 = vmatmul.mubr.f32.gmra.mrb[118].mxu1 %v886_v21  ;;  %1319 = vmatprep.mubr.f32.mxu0 %v901_v25  ;;  %v982_v25 = vld [vmem:[#allocation4 + $0x6f0] sm:$0xff] }
 0x189   :  { %1689 = vmatprep.mubr.f32.mxu1 %v891_v24 }
 0x18b   :  { %1320 = vmatmul.mubr.f32.gmra.mrb[134].mxu0 %v900_v26 }
 0x18c   :  { %1690 = vmatmul.mubr.f32.gmra.mrb[120].mxu1 %v890_v0  ;;  %v987_v0 = vld [vmem:[#allocation4 + $0x718] sm:$0xff] }
 0x18d   :  { %1694 = vmatprep.mubr.f32.mxu1 %v895_v61 }
 0x190   :  { %1695 = vmatmul.mubr.f32.gmra.mrb[122].mxu1 %v894_v27 }
 0x191   :  { %1699 = vmatprep.mubr.f32.mxu1 %v899_v28 }
 0x194   :  { %1700 = vmatmul.mubr.f32.gmra.mrb[124].mxu1 %v898_v29 }
 0x195   :  { %1704 = vmatprep.mubr.f32.mxu1 %v903_v30  ;;  %v986_v30 = vld [vmem:[#allocation4 + $0x710] sm:$0xff] }
 0x198   :  { %1705 = vmatmul.mubr.f32.gmra.mrb[126].mxu1 %v902_v31  ;;  %v991_v31 = vld [vmem:[#allocation4 + $0x738] sm:$0xff] }
 0x199   :  { %1709 = vmatprep.mubr.f32.mxu1 %v907_v32 }
 0x19c   :  { %1710 = vmatmul.mubr.f32.gmra.mrb[0].mxu1 %v906_v3 }
 0x19d   :  { %1714 = vmatprep.mubr.f32.mxu1 %v911_v33 }
 0x1a0   :  { %1715 = vmatmul.mubr.f32.gmra.mrb[2].mxu1 %v910_v34 }
 0x1a1   :  { %1719 = vmatprep.mubr.f32.mxu1 %v915_v35 }
 0x1a4   :  { %1720 = vmatmul.mubr.f32.gmra.mrb[4].mxu1 %v914_v36  ;;  %v990_v36 = vld [vmem:[#allocation4 + $0x730] sm:$0xff] }
 0x1a5   :  { %1724 = vmatprep.mubr.f32.mxu1 %v919_v37  ;;  %v995_v37 = vld [vmem:[#allocation4 + $0x758] sm:$0xff] }
 0x1a8   :  { %1725 = vmatmul.mubr.f32.gmra.mrb[6].mxu1 %v918_v38 }
 0x1a9   :  { %1729 = vmatprep.mubr.f32.mxu1 %v923_v4 }
 0x1ac   :  { %1730 = vmatmul.mubr.f32.gmra.mrb[8].mxu1 %v922_v39 }
 0x1ad   :  { %1734 = vmatprep.mubr.f32.mxu1 %v927_v40 }
 0x1b0   :  { %1735 = vmatmul.mubr.f32.gmra.mrb[10].mxu1 %v926_v41 }
 0x1b1   :  { %1739 = vmatprep.mubr.f32.mxu1 %v931_v42  ;;  %v994_v42 = vld [vmem:[#allocation4 + $0x750] sm:$0xff] }
 0x1b4   :  { %1740 = vmatmul.mubr.f32.gmra.mrb[12].mxu1 %v930_v43  ;;  %v999_v43 = vld [vmem:[#allocation4 + $0x778] sm:$0xff] }
 0x1b5   :  { %1744 = vmatprep.mubr.f32.mxu1 %v935_v44 }
 0x1b8   :  { %1745 = vmatmul.mubr.f32.gmra.mrb[14].mxu1 %v934_v7 }
 0x1b9   :  { %1749 = vmatprep.mubr.f32.mxu1 %v939_v45 }
 0x1bc   :  { %1750 = vmatmul.mubr.f32.gmra.mrb[16].mxu1 %v938_v46 }
 0x1bd   :  { %1754 = vmatprep.mubr.f32.mxu1 %v943_v47 }
 0x1c0   :  { %1755 = vmatmul.mubr.f32.gmra.mrb[18].mxu1 %v942_v48  ;;  %v998_v48 = vld [vmem:[#allocation4 + $0x770] sm:$0xff] }
 0x1c1   :  { %1759 = vmatprep.mubr.f32.mxu1 %v947_v49  ;;  %v1003_v49 = vld [vmem:[#allocation4 + $0x798] sm:$0xff] }
 0x1c4   :  { %1760 = vmatmul.mubr.f32.gmra.mrb[20].mxu1 %v946_v50 }
 0x1c5   :  { %1764 = vmatprep.mubr.f32.mxu1 %v951_v17 }
 0x1c8   :  { %1765 = vmatmul.mubr.f32.gmra.mrb[22].mxu1 %v950_v51 }
 0x1c9   :  { %1769 = vmatprep.mubr.f32.mxu1 %v955_v52 }
 0x1cc   :  { %1770 = vmatmul.mubr.f32.gmra.mrb[24].mxu1 %v954_v54 }
 0x1cd   :  { %1774 = vmatprep.mubr.f32.mxu1 %v959_v55  ;;  %v1002_v55 = vld [vmem:[#allocation4 + $0x790] sm:$0xff] }
 0x1d0   :  { %1775 = vmatmul.mubr.f32.gmra.mrb[26].mxu1 %v958_v57  ;;  %v1007_v57 = vld [vmem:[#allocation4 + $0x7b8] sm:$0xff] }
 0x1d1   :  { %1779 = vmatprep.mubr.f32.mxu1 %v963_v58 }
 0x1d2   :  { %v1146_v60 = vpop.f32.mrb[64].mxu0 }
 0x1d3   :  { %v1148_v62 = vpop.f32.mrb[65].mxu0 }
 0x1d4   :  { %1780 = vmatmul.mubr.f32.gmra.mrb[28].mxu1 %v962_v59 }
 0x1d5   :  { %1784 = vmatprep.mubr.f32.mxu1 %v967_v23 }
 0x1d6   :  { %v1151_v2 = vpop.f32.mrb[66].mxu0 }
 0x1d7   :  { %v1153_v53 = vpop.f32.mrb[67].mxu0 }
 0x1d8   :  { %1785 = vmatmul.mubr.f32.gmra.mrb[30].mxu1 %v966_v63  ;;  %v1006_v63 = vld [vmem:[#allocation4 + $0x7b0] sm:$0xff] }
 0x1d9   :  { %1789 = vmatprep.mubr.f32.mxu1 %v971_v1  ;;  %v1011_v1 = vld [vmem:[#allocation4 + $0x7d8] sm:$0xff] }
 0x1da   :  { %v1156_v8 = vpop.f32.mrb[68].mxu0 }
 0x1db   :  { %v1158_v9 = vpop.f32.mrb[69].mxu0 }
 0x1dc   :  { %1790 = vmatmul.mubr.f32.gmra.mrb[32].mxu1 %v970_v5  ;;  %v1010_v9 = vld [vmem:[#allocation4 + $0x7d0] sm:$0xff] }
 0x1dd   :  { %1794 = vmatprep.mubr.f32.mxu1 %v975_v6 }
 0x1de   :  { %v1161_v13 = vpop.f32.mrb[70].mxu0 }
 0x1df   :  { %v1531_v12 = vpop.f32.mrb[56].mxu1  ;;  %v1163_v16 = vpop.f32.mrb[71].mxu0 }
 0x1e0   :  { %v1532_v14 = vadd.f32 %v1531_v12, %v1146_v60  ;;  %v1533_v15 = vpop.f32.mrb[57].mxu1  ;;  %1795 = vmatmul.mubr.f32.gmra.mrb[34].mxu1 %v974_v10  ;;  %v1015_v10 = vld [vmem:[#allocation4 + $0x7f8] sm:$0xff]  ;;  %v1014_v16 = vld [vmem:[#allocation4 + $0x7f0] sm:$0xff] }
 0x1e1   :  { %1799 = vmatprep.mubr.f32.mxu1 %v979_v11 }
 0x1e2   :  { %3042 = vmatprep.mubr.f32.mxu0 %v1532_v14  ;;  %v1166_v20 = vpop.f32.mrb[72].mxu0 }
 0x1e3   :  { %v1536_v56 = vpop.f32.mrb[58].mxu1  ;;  %v1168_v24 = vpop.f32.mrb[73].mxu0 }
 0x1e4   :  { %v1537_v21 = vadd.f32 %v1536_v56, %v1151_v2  ;;  %v1538_v22 = vpop.f32.mrb[59].mxu1  ;;  %1800 = vmatmul.mubr.f32.gmra.mrb[36].mxu1 %v978_v18 }
 0x1e5   :  { %1804 = vmatprep.mubr.f32.mxu1 %v983_v19 }
 0x1e6   :  { %3043 = vmatmul.mubr.f32.vlgmr.msra.gmra.mrb[0].mxu0 %v1537_v21  ;;  %v1171_v61 = vpop.f32.mrb[74].mxu0 }
 0x1e7   :  { %v1541_v26 = vpop.f32.mrb[60].mxu1  ;;  %v1173_v29 = vpop.f32.mrb[75].mxu0 }
 0x1e8   :  { %v1542_v27 = vadd.f32 %v1541_v26, %v1156_v8  ;;  %v1543_v28 = vpop.f32.mrb[61].mxu1  ;;  %1805 = vmatmul.mubr.f32.gmra.mrb[38].mxu1 %v982_v25 }
 0x1e9   :  { %1809 = vmatprep.mubr.f32.mxu1 %v987_v0 }
 0x1ea   :  { %3045 = vmatprep.mubr.f32.mxu0 %v1542_v27  ;;  %v1176_v3 = vpop.f32.mrb[76].mxu0 }
 0x1eb   :  { %v1546_v32 = vpop.f32.mrb[62].mxu1  ;;  %v1178_v35 = vpop.f32.mrb[77].mxu0 }
 0x1ec   :  { %v1547_v33 = vadd.f32 %v1546_v32, %v1161_v13  ;;  %v1548_v34 = vpop.f32.mrb[63].mxu1  ;;  %1810 = vmatmul.mubr.f32.gmra.mrb[40].mxu1 %v986_v30 }
 0x1ed   :  { %1814 = vmatprep.mubr.f32.mxu1 %v991_v31 }
 0x1ee   :  { %3046 = vmatmul.mubr.f32.gmra.mrb[2].mxu0 %v1547_v33  ;;  %v1181_v4 = vpop.f32.mrb[78].mxu0 }
 0x1ef   :  { %v1551_v38 = vpop.f32.mrb[64].mxu1  ;;  %v1183_v41 = vpop.f32.mrb[79].mxu0 }
 0x1f0   :  { %v1552_v39 = vadd.f32 %v1551_v38, %v1166_v20  ;;  %v1553_v40 = vpop.f32.mrb[65].mxu1  ;;  %1815 = vmatmul.mubr.f32.gmra.mrb[42].mxu1 %v990_v36 }
 0x1f1   :  { %1819 = vmatprep.mubr.f32.mxu1 %v995_v37 }
 0x1f2   :  { %3048 = vmatprep.mubr.f32.mxu0 %v1552_v39  ;;  %v1186_v7 = vpop.f32.mrb[80].mxu0 }
 0x1f3   :  { %v1556_v44 = vpop.f32.mrb[66].mxu1  ;;  %v1188_v47 = vpop.f32.mrb[81].mxu0 }
 0x1f4   :  { %v1557_v45 = vadd.f32 %v1556_v44, %v1171_v61  ;;  %v1558_v46 = vpop.f32.mrb[67].mxu1  ;;  %1820 = vmatmul.mubr.f32.gmra.mrb[44].mxu1 %v994_v42 }
 0x1f5   :  { %1824 = vmatprep.mubr.f32.mxu1 %v999_v43 }
 0x1f6   :  { %3049 = vmatmul.mubr.f32.gmra.mrb[4].mxu0 %v1557_v45  ;;  %v1191_v17 = vpop.f32.mrb[82].mxu0 }
 0x1f7   :  { %v1561_v50 = vpop.f32.mrb[68].mxu1  ;;  %v1193_v54 = vpop.f32.mrb[83].mxu0 }
 0x1f8   :  { %v1562_v51 = vadd.f32 %v1561_v50, %v1176_v3  ;;  %v1563_v52 = vpop.f32.mrb[69].mxu1  ;;  %1825 = vmatmul.mubr.f32.gmra.mrb[46].mxu1 %v998_v48 }
 0x1f9   :  { %1829 = vmatprep.mubr.f32.mxu1 %v1003_v49 }
 0x1fa   :  { %3051 = vmatprep.mubr.f32.mxu0 %v1562_v51  ;;  %v1196_v59 = vpop.f32.mrb[84].mxu0 }
 0x1fb   :  { %v1566_v58 = vpop.f32.mrb[70].mxu1  ;;  %v1198_v62 = vpop.f32.mrb[85].mxu0 }
 0x1fc   :  { %v1567_v23 = vadd.f32 %v1566_v58, %v1181_v4  ;;  %v1568_v60 = vpop.f32.mrb[71].mxu1  ;;  %1830 = vmatmul.mubr.f32.gmra.mrb[48].mxu1 %v1002_v55 }
 0x1fd   :  { %1834 = vmatprep.mubr.f32.mxu1 %v1007_v57 }
 0x1fe   :  { %3052 = vmatmul.mubr.f32.gmra.mrb[6].mxu0 %v1567_v23  ;;  %v1201_v53 = vpop.f32.mrb[86].mxu0 }
 0x1ff   :  { %v1571_v2 = vpop.f32.mrb[72].mxu1  ;;  %v1203_v8 = vpop.f32.mrb[87].mxu0 }
 0x200   :  { %v1572_v5 = vadd.f32 %v1571_v2, %v1186_v7  ;;  %v1573_v6 = vpop.f32.mrb[73].mxu1  ;;  %1835 = vmatmul.mubr.f32.gmra.mrb[50].mxu1 %v1006_v63 }
 0x201   :  { %1839 = vmatprep.mubr.f32.mxu1 %v1011_v1 }
 0x202   :  { %3054 = vmatprep.mubr.f32.mxu0 %v1572_v5  ;;  %v1206_v12 = vpop.f32.mrb[88].mxu0 }
 0x203   :  { %v1576_v11 = vpop.f32.mrb[74].mxu1  ;;  %v1208_v15 = vpop.f32.mrb[89].mxu0 }
 0x204   :  { %v1577_v13 = vadd.f32 %v1576_v11, %v1191_v17  ;;  %v1578_v14 = vpop.f32.mrb[75].mxu1  ;;  %1840 = vmatmul.mubr.f32.gmra.mrb[52].mxu1 %v1010_v9 }
 0x205   :  { %1844 = vmatprep.mubr.f32.mxu1 %v1015_v10 }
 0x206   :  { %3055 = vmatmul.mubr.f32.gmra.mrb[8].mxu0 %v1577_v13  ;;  %v1211_v19 = vpop.f32.mrb[90].mxu0 }
 0x207   :  { %v1581_v18 = vpop.f32.mrb[76].mxu1  ;;  %v1213_v21 = vpop.f32.mrb[91].mxu0 }
 0x208   :  { %v1582_v56 = vadd.f32 %v1581_v18, %v1196_v59  ;;  %v1583_v20 = vpop.f32.mrb[77].mxu1  ;;  %1845 = vmatmul.mubr.f32.gmra.mrb[54].mxu1 %v1014_v16 }
 0x20a   :  { %3057 = vmatprep.mubr.f32.mxu0 %v1582_v56  ;;  %v1216_v24 = vpop.f32.mrb[92].mxu0 }
 0x20b   :  { %v1586_v22 = vpop.f32.mrb[78].mxu1  ;;  %v1218_v26 = vpop.f32.mrb[93].mxu0 }
 0x20c   :  { %v1587_v25 = vadd.f32 %v1586_v22, %v1201_v53  ;;  %v1588_v0 = vpop.f32.mrb[79].mxu1 }
 0x20e   :  { %3058 = vmatmul.mubr.f32.gmra.mrb[10].mxu0 %v1587_v25  ;;  %v1221_v27 = vpop.f32.mrb[94].mxu0 }
 0x20f   :  { %v1591_v61 = vpop.f32.mrb[80].mxu1  ;;  %v1223_v30 = vpop.f32.mrb[95].mxu0 }
 0x210   :  { %v1592_v28 = vadd.f32 %v1591_v61, %v1206_v12  ;;  %v1593_v29 = vpop.f32.mrb[81].mxu1 }
 0x212   :  { %3060 = vmatprep.mubr.f32.mxu0 %v1592_v28  ;;  %v1226_v32 = vpop.f32.mrb[96].mxu0 }
 0x213   :  { %v1596_v31 = vpop.f32.mrb[82].mxu1  ;;  %v1228_v34 = vpop.f32.mrb[97].mxu0 }
 0x214   :  { %v1597_v3 = vadd.f32 %v1596_v31, %v1211_v19  ;;  %v1598_v33 = vpop.f32.mrb[83].mxu1 }
 0x216   :  { %3061 = vmatmul.mubr.f32.gmra.mrb[12].mxu0 %v1597_v3  ;;  %v1231_v36 = vpop.f32.mrb[98].mxu0 }
 0x217   :  { %v1601_v35 = vpop.f32.mrb[84].mxu1  ;;  %v1233_v4 = vpop.f32.mrb[99].mxu0 }
 0x218   :  { %v1602_v37 = vadd.f32 %v1601_v35, %v1216_v24  ;;  %v1603_v38 = vpop.f32.mrb[85].mxu1 }
 0x21a   :  { %3063 = vmatprep.mubr.f32.mxu0 %v1602_v37  ;;  %v1236_v40 = vpop.f32.mrb[100].mxu0 }
 0x21b   :  { %v1606_v39 = vpop.f32.mrb[86].mxu1  ;;  %v1238_v43 = vpop.f32.mrb[101].mxu0 }
 0x21c   :  { %v1607_v41 = vadd.f32 %v1606_v39, %v1221_v27  ;;  %v1608_v42 = vpop.f32.mrb[87].mxu1 }
 0x21e   :  { %3064 = vmatmul.mubr.f32.gmra.mrb[14].mxu0 %v1607_v41  ;;  %v1241_v7 = vpop.f32.mrb[102].mxu0 }
 0x21f   :  { %v1611_v44 = vpop.f32.mrb[88].mxu1  ;;  %v1243_v47 = vpop.f32.mrb[103].mxu0 }
 0x220   :  { %v1612_v45 = vadd.f32 %v1611_v44, %v1226_v32  ;;  %v1613_v46 = vpop.f32.mrb[89].mxu1 }
 0x222   :  { %3066 = vmatprep.mubr.f32.mxu0 %v1612_v45  ;;  %v1246_v49 = vpop.f32.mrb[104].mxu0 }
 0x223   :  { %v1616_v48 = vpop.f32.mrb[90].mxu1  ;;  %v1248_v51 = vpop.f32.mrb[105].mxu0 }
 0x224   :  { %v1617_v50 = vadd.f32 %v1616_v48, %v1231_v36  ;;  %v1618_v17 = vpop.f32.mrb[91].mxu1 }
 0x226   :  { %3067 = vmatmul.mubr.f32.gmra.mrb[16].mxu0 %v1617_v50  ;;  %v1251_v54 = vpop.f32.mrb[106].mxu0 }
 0x227   :  { %v1621_v52 = vpop.f32.mrb[92].mxu1  ;;  %v1253_v58 = vpop.f32.mrb[107].mxu0 }
 0x228   :  { %v1622_v55 = vadd.f32 %v1621_v52, %v1236_v40  ;;  %v1623_v57 = vpop.f32.mrb[93].mxu1 }
 0x22a   :  { %3069 = vmatprep.mubr.f32.mxu0 %v1622_v55  ;;  %v1256_v23 = vpop.f32.mrb[108].mxu0 }
 0x22b   :  { %v1626_v59 = vpop.f32.mrb[94].mxu1  ;;  %v1258_v63 = vpop.f32.mrb[109].mxu0 }
 0x22c   :  { %v1627_v60 = vadd.f32 %v1626_v59, %v1241_v7  ;;  %v1628_v62 = vpop.f32.mrb[95].mxu1 }
 0x22e   :  { %3070 = vmatmul.mubr.f32.gmra.mrb[18].mxu0 %v1627_v60  ;;  %v1261_v2 = vpop.f32.mrb[110].mxu0 }
 0x22f   :  { %v1631_v1 = vpop.f32.mrb[96].mxu1  ;;  %v1263_v6 = vpop.f32.mrb[111].mxu0 }
 0x230   :  { %v1632_v53 = vadd.f32 %v1631_v1, %v1246_v49  ;;  %v1633_v5 = vpop.f32.mrb[97].mxu1 }
 0x232   :  { %3072 = vmatprep.mubr.f32.mxu0 %v1632_v53  ;;  %v1266_v9 = vpop.f32.mrb[112].mxu0 }
 0x233   :  { %v1636_v8 = vpop.f32.mrb[98].mxu1  ;;  %v1268_v12 = vpop.f32.mrb[113].mxu0 }
 0x234   :  { %v1637_v10 = vadd.f32 %v1636_v8, %v1251_v54  ;;  %v1638_v11 = vpop.f32.mrb[99].mxu1 }
 0x236   :  { %3073 = vmatmul.mubr.f32.gmra.mrb[20].mxu0 %v1637_v10  ;;  %v1271_v14 = vpop.f32.mrb[114].mxu0 }
 0x237   :  { %v1641_v13 = vpop.f32.mrb[100].mxu1  ;;  %v1273_v18 = vpop.f32.mrb[115].mxu0 }
 0x238   :  { %v1642_v15 = vadd.f32 %v1641_v13, %v1256_v23  ;;  %v1643_v16 = vpop.f32.mrb[101].mxu1 }
 0x23a   :  { %3075 = vmatprep.mubr.f32.mxu0 %v1642_v15  ;;  %v1276_v56 = vpop.f32.mrb[116].mxu0 }
 0x23b   :  { %v1646_v19 = vpop.f32.mrb[102].mxu1  ;;  %v1278_v22 = vpop.f32.mrb[117].mxu0 }
 0x23c   :  { %v1647_v20 = vadd.f32 %v1646_v19, %v1261_v2  ;;  %v1648_v21 = vpop.f32.mrb[103].mxu1 }
 0x23e   :  { %3076 = vmatmul.mubr.f32.gmra.mrb[22].mxu0 %v1647_v20  ;;  %v1281_v25 = vpop.f32.mrb[118].mxu0 }
 0x23f   :  { %v1651_v24 = vpop.f32.mrb[104].mxu1  ;;  %v1283_v61 = vpop.f32.mrb[119].mxu0 }
 0x240   :  { %v1652_v0 = vadd.f32 %v1651_v24, %v1266_v9  ;;  %v1653_v26 = vpop.f32.mrb[105].mxu1 }
 0x242   :  { %3078 = vmatprep.mubr.f32.mxu0 %v1652_v0  ;;  %v1286_v28 = vpop.f32.mrb[120].mxu0 }
 0x243   :  { %v1656_v27 = vpop.f32.mrb[106].mxu1  ;;  %v1288_v31 = vpop.f32.mrb[121].mxu0 }
 0x244   :  { %v1657_v29 = vadd.f32 %v1656_v27, %v1271_v14  ;;  %v1658_v30 = vpop.f32.mrb[107].mxu1 }
 0x246   :  { %3079 = vmatmul.mubr.f32.gmra.mrb[24].mxu0 %v1657_v29  ;;  %v1291_v3 = vpop.f32.mrb[122].mxu0 }
 0x247   :  { %v1661_v32 = vpop.f32.mrb[108].mxu1  ;;  %v1293_v35 = vpop.f32.mrb[123].mxu0 }
 0x248   :  { %v1662_v33 = vadd.f32 %v1661_v32, %v1276_v56  ;;  %v1663_v34 = vpop.f32.mrb[109].mxu1 }
 0x24a   :  { %3081 = vmatprep.mubr.f32.mxu0 %v1662_v33  ;;  %v1296_v37 = vpop.f32.mrb[124].mxu0 }
 0x24b   :  { %v1666_v36 = vpop.f32.mrb[110].mxu1  ;;  %v1298_v39 = vpop.f32.mrb[125].mxu0 }
 0x24c   :  { %v1667_v38 = vadd.f32 %v1666_v36, %v1281_v25  ;;  %v1668_v4 = vpop.f32.mrb[111].mxu1 }
 0x24e   :  { %3082 = vmatmul.mubr.f32.gmra.mrb[26].mxu0 %v1667_v38  ;;  %v1301_v41 = vpop.f32.mrb[126].mxu0 }
 0x24f   :  { %v1671_v40 = vpop.f32.mrb[112].mxu1  ;;  %v1303_v44 = vpop.f32.mrb[127].mxu0 }
 0x250   :  { %v1672_v42 = vadd.f32 %v1671_v40, %v1286_v28  ;;  %v1673_v43 = vpop.f32.mrb[113].mxu1 }
 0x252   :  { %3084 = vmatprep.mubr.f32.mxu0 %v1672_v42  ;;  %v1306_v45 = vpop.f32.mrb[128].mxu0 }
 0x253   :  { %v1676_v7 = vpop.f32.mrb[114].mxu1  ;;  %v1308_v48 = vpop.f32.mrb[129].mxu0 }
 0x254   :  { %v1677_v46 = vadd.f32 %v1676_v7, %v1291_v3  ;;  %v1678_v47 = vpop.f32.mrb[115].mxu1 }
 0x256   :  { %3085 = vmatmul.mubr.f32.gmra.mrb[28].mxu0 %v1677_v46  ;;  %v1311_v50 = vpop.f32.mrb[130].mxu0  ;;  %v3934_v46 = vld [vmem:[%s4020_s5] ss:$0 sm:$0xff]  ;;  %s3711_s5 = smov [#allocation13]  }
 0x257   :  { %v1681_v49 = vpop.f32.mrb[116].mxu1  ;;  %v1313_v52 = vpop.f32.mrb[131].mxu0  ;;  %s2707_s12 = sshll.u32 %s3711_s5, 4  ;;  %s2708_s12 = int_to_ptr.vmem [resolvable:$true] %s2707_s12 }
 0x258   :  { %v1682_v17 = vadd.f32 %v1681_v49, %v1296_v37  ;;  %v1683_v51 = vpop.f32.mrb[117].mxu1  ;;  %s3671_s13 = scalar_lea.vmem %s2708_s12, 8192  ;;  %p3676_p13 = scmp.lt.s32.totalorder %s2708_s12, %s2708_s12 }
 0x259   :  { %p3672_p12 = scmp.ne.s32.totalorder %s2708_s12, %s3671_s13  ;;  %p3677_p0 = scmp.lt.s32.totalorder %s3671_s13, %s3671_s13 }
 0x25a   :  { %3087 = vmatprep.mubr.f32.mxu0 %v1682_v17  ;;  %v1316_v55 = vpop.f32.mrb[132].mxu0 }
 0x25b   :  { %v1686_v54 = vpop.f32.mrb[118].mxu1  ;;  %v1318_v59 = vpop.f32.mrb[133].mxu0  ;;  %p3678_p1 = por %p3677_p0, %p3676_p13 }
 0x25c   :  { %v1687_v57 = vadd.f32 %v1686_v54, %v1301_v41  ;;  %v1688_v58 = vpop.f32.mrb[119].mxu1 }
 0x25d   :  { %p3679_p2 = pnand %p3678_p1, %p3672_p12 }
 0x25e   :  { %3088 = vmatmul.mubr.f32.gmra.mrb[30].mxu0 %v1687_v57  ;;  %v1321_v60 = vpop.f32.mrb[134].mxu0 }
 0x25f   :  { %v1691_v23 = vpop.f32.mrb[120].mxu1  ;;  %v1323_v1 = vpop.f32.mrb[135].mxu0 }
 0x260   :  { %v1692_v62 = vadd.f32 %v1691_v23, %v1306_v45  ;;  %v1693_v63 = vpop.f32.mrb[121].mxu1 }
 0x262   :  { %3090 = vmatprep.mubr.f32.mxu0 %v1692_v62 }
 0x263   :  { %v1696_v2 = vpop.f32.mrb[122].mxu1 }
 0x264   :  { %v1697_v53 = vadd.f32 %v1696_v2, %v1311_v50  ;;  %v1698_v5 = vpop.f32.mrb[123].mxu1 }
 0x266   :  { %3091 = vmatmul.mubr.f32.gmra.mrb[32].mxu0 %v1697_v53 }
 0x267   :  { %v1701_v6 = vpop.f32.mrb[124].mxu1 }
 0x268   :  { %v1702_v8 = vadd.f32 %v1701_v6, %v1316_v55  ;;  %v1703_v9 = vpop.f32.mrb[125].mxu1 }
 0x26a   :  { %3093 = vmatprep.mubr.f32.mxu0 %v1702_v8 }
 0x26b   :  { %v1706_v10 = vpop.f32.mrb[126].mxu1 }
 0x26c   :  { %v1707_v11 = vadd.f32 %v1706_v10, %v1321_v60  ;;  %v1708_v12 = vpop.f32.mrb[127].mxu1 }
 0x26e   :  { %3094 = vmatmul.mubr.f32.gmra.mrb[34].mxu0 %v1707_v11 }
 0x26f   :  { %v1711_v13 = vpop.f32.mrb[0].mxu1 }
 0x270   :  { %v1713_v14 = vpop.f32.mrb[1].mxu1  ;;  %3096 = vmatprep.mubr.f32.mxu0 %v1711_v13 }
 0x273   :  { %v1716_v15 = vpop.f32.mrb[2].mxu1 }
 0x274   :  { %v1718_v16 = vpop.f32.mrb[3].mxu1  ;;  %3097 = vmatmul.mubr.f32.gmra.mrb[36].mxu0 %v1716_v15 }
 0x277   :  { %v1721_v18 = vpop.f32.mrb[4].mxu1 }
 0x278   :  { %v1723_v19 = vpop.f32.mrb[5].mxu1  ;;  %3099 = vmatprep.mubr.f32.mxu0 %v1721_v18 }
 0x27b   :  { %v1726_v56 = vpop.f32.mrb[6].mxu1 }
 0x27c   :  { %v1728_v20 = vpop.f32.mrb[7].mxu1  ;;  %3100 = vmatmul.mubr.f32.gmra.mrb[38].mxu0 %v1726_v56 }
 0x27f   :  { %v1731_v21 = vpop.f32.mrb[8].mxu1 }
 0x280   :  { %v1733_v22 = vpop.f32.mrb[9].mxu1  ;;  %3102 = vmatprep.mubr.f32.mxu0 %v1731_v21 }
 0x283   :  { %v1736_v24 = vpop.f32.mrb[10].mxu1 }
 0x284   :  { %v1738_v25 = vpop.f32.mrb[11].mxu1  ;;  %3103 = vmatmul.mubr.f32.gmra.mrb[40].mxu0 %v1736_v24 }
 0x287   :  { %v1741_v0 = vpop.f32.mrb[12].mxu1 }
 0x288   :  { %v1743_v26 = vpop.f32.mrb[13].mxu1  ;;  %3105 = vmatprep.mubr.f32.mxu0 %v1741_v0 }
 0x28b   :  { %v1746_v61 = vpop.f32.mrb[14].mxu1 }
 0x28c   :  { %v1748_v27 = vpop.f32.mrb[15].mxu1  ;;  %3106 = vmatmul.mubr.f32.gmra.mrb[42].mxu0 %v1746_v61 }
 0x28f   :  { %v1751_v28 = vpop.f32.mrb[16].mxu1 }
 0x290   :  { %v1753_v29 = vpop.f32.mrb[17].mxu1  ;;  %3108 = vmatprep.mubr.f32.mxu0 %v1751_v28 }
 0x293   :  { %v1756_v30 = vpop.f32.mrb[18].mxu1 }
 0x294   :  { %v1758_v31 = vpop.f32.mrb[19].mxu1  ;;  %3109 = vmatmul.mubr.f32.gmra.mrb[44].mxu0 %v1756_v30 }
 0x297   :  { %v1761_v32 = vpop.f32.mrb[20].mxu1 }
 0x298   :  { %v1763_v3 = vpop.f32.mrb[21].mxu1  ;;  %3111 = vmatprep.mubr.f32.mxu0 %v1761_v32 }
 0x29b   :  { %v1766_v33 = vpop.f32.mrb[22].mxu1 }
 0x29c   :  { %v1768_v34 = vpop.f32.mrb[23].mxu1  ;;  %3112 = vmatmul.mubr.f32.gmra.mrb[46].mxu0 %v1766_v33 }
 0x29f   :  { %v1771_v35 = vpop.f32.mrb[24].mxu1 }
 0x2a0   :  { %v1773_v36 = vpop.f32.mrb[25].mxu1  ;;  %3114 = vmatprep.mubr.f32.mxu0 %v1771_v35 }
 0x2a3   :  { %v1776_v37 = vpop.f32.mrb[26].mxu1 }
 0x2a4   :  { %v1778_v38 = vpop.f32.mrb[27].mxu1  ;;  %3115 = vmatmul.mubr.f32.gmra.mrb[48].mxu0 %v1776_v37 }
 0x2a7   :  { %v1781_v4 = vpop.f32.mrb[28].mxu1 }
 0x2a8   :  { %v1783_v39 = vpop.f32.mrb[29].mxu1  ;;  %3117 = vmatprep.mubr.f32.mxu0 %v1781_v4 }
 0x2ab   :  { %v1786_v40 = vpop.f32.mrb[30].mxu1 }
 0x2ac   :  { %v1788_v41 = vpop.f32.mrb[31].mxu1  ;;  %3118 = vmatmul.mubr.f32.gmra.mrb[50].mxu0 %v1786_v40 }
 0x2af   :  { %v1791_v42 = vpop.f32.mrb[32].mxu1 }
 0x2b0   :  { %v1793_v43 = vpop.f32.mrb[33].mxu1  ;;  %3120 = vmatprep.mubr.f32.mxu0 %v1791_v42 }
 0x2b3   :  { %v1796_v44 = vpop.f32.mrb[34].mxu1 }
 0x2b4   :  { %v1798_v7 = vpop.f32.mrb[35].mxu1  ;;  %3121 = vmatmul.mubr.f32.gmra.mrb[52].mxu0 %v1796_v44 }
 0x2b7   :  { %v1801_v45 = vpop.f32.mrb[36].mxu1 }
 0x2b8   :  { %v1803_v47 = vpop.f32.mrb[37].mxu1  ;;  %3123 = vmatprep.mubr.f32.mxu0 %v1801_v45 }
 0x2b9   :  { %v3044_v48 = vpop.f32.mrb[0].mxu0 }
 0x2ba   :  { %v3330_v49 = vadd.f32 %v3044_v48, %v3934_v46  ;;  %v2191_v50 = vpop.f32.mrb[1].mxu0 }
 0x2bb   :  { %v3331_v17 = vadd.f32 %v3934_v46, %v2191_v50  ;;  %v1806_v51 = vpop.f32.mrb[38].mxu1 }
 0x2bc   :  { %v2575_v52 = vmax.f32 %v3330_v49, 0.0  ;;  %v1808_v54 = vpop.f32.mrb[39].mxu1  ;;  %3124 = vmatmul.mubr.f32.gmra.mrb[54].mxu0 %v1806_v51 }
 0x2bd   :  { %v2574_v55 = vmax.f32 %v3331_v17, 0.0 }
 0x2be   :  { %2639 = vst [vmem:[#allocation13 + $0x8] sm:$0xff] %v2575_v52 }
 0x2bf   :  { %2638 = vst [vmem:[#allocation13] sm:$0xff] %v2574_v55  ;;  %v1811_v57 = vpop.f32.mrb[40].mxu1 }
 0x2c0   :  { %v1813_v58 = vpop.f32.mrb[41].mxu1  ;;  %3126 = vmatprep.mubr.f32.mxu0 %v1811_v57 }
 0x2c1   :  { %v3047_v59 = vpop.f32.mrb[2].mxu0 }
 0x2c2   :  { %v3332_v23 = vadd.f32 %v3047_v59, %v3934_v46  ;;  %v2201_v60 = vpop.f32.mrb[3].mxu0 }
 0x2c3   :  { %v3333_v62 = vadd.f32 %v3934_v46, %v2201_v60  ;;  %v1816_v63 = vpop.f32.mrb[42].mxu1 }
 0x2c4   :  { %v2577_v1 = vmax.f32 %v3332_v23, 0.0  ;;  %v1818_v2 = vpop.f32.mrb[43].mxu1  ;;  %3127 = vmatmul.mubr.f32.gmra.mrb[56].mxu0 %v1816_v63 }
 0x2c5   :  { %v2576_v53 = vmax.f32 %v3333_v62, 0.0 }
 0x2c6   :  { %2641 = vst [vmem:[#allocation13 + $0x18] sm:$0xff] %v2577_v1 }
 0x2c7   :  { %2640 = vst [vmem:[#allocation13 + $0x10] sm:$0xff] %v2576_v53  ;;  %v1821_v5 = vpop.f32.mrb[44].mxu1 }
 0x2c8   :  { %v1823_v6 = vpop.f32.mrb[45].mxu1  ;;  %3129 = vmatprep.mubr.f32.mxu0 %v1821_v5 }
 0x2c9   :  { %v3050_v8 = vpop.f32.mrb[4].mxu0 }
 0x2ca   :  { %v3334_v9 = vadd.f32 %v3050_v8, %v3934_v46  ;;  %v2211_v10 = vpop.f32.mrb[5].mxu0 }
 0x2cb   :  { %v3335_v11 = vadd.f32 %v3934_v46, %v2211_v10  ;;  %v1826_v12 = vpop.f32.mrb[46].mxu1 }
 0x2cc   :  { %v2579_v13 = vmax.f32 %v3334_v9, 0.0  ;;  %v1828_v14 = vpop.f32.mrb[47].mxu1  ;;  %3130 = vmatmul.mubr.f32.gmra.mrb[58].mxu0 %v1826_v12 }
 0x2cd   :  { %v2578_v15 = vmax.f32 %v3335_v11, 0.0 }
 0x2ce   :  { %2643 = vst [vmem:[#allocation13 + $0x28] sm:$0xff] %v2579_v13 }
 0x2cf   :  { %2642 = vst [vmem:[#allocation13 + $0x20] sm:$0xff] %v2578_v15  ;;  %v1831_v16 = vpop.f32.mrb[48].mxu1 }
 0x2d0   :  { %v1833_v18 = vpop.f32.mrb[49].mxu1  ;;  %3132 = vmatprep.mubr.f32.mxu0 %v1831_v16 }
 0x2d1   :  { %v3053_v19 = vpop.f32.mrb[6].mxu0 }
 0x2d2   :  { %v3336_v56 = vadd.f32 %v3053_v19, %v3934_v46  ;;  %v2221_v20 = vpop.f32.mrb[7].mxu0 }
 0x2d3   :  { %v3337_v21 = vadd.f32 %v3934_v46, %v2221_v20  ;;  %v1836_v22 = vpop.f32.mrb[50].mxu1 }
 0x2d4   :  { %v2581_v24 = vmax.f32 %v3336_v56, 0.0  ;;  %v1838_v25 = vpop.f32.mrb[51].mxu1  ;;  %3133 = vmatmul.mubr.f32.gmra.mrb[60].mxu0 %v1836_v22 }
 0x2d5   :  { %v2580_v0 = vmax.f32 %v3337_v21, 0.0 }
 0x2d6   :  { %2645 = vst [vmem:[#allocation13 + $0x38] sm:$0xff] %v2581_v24 }
 0x2d7   :  { %2644 = vst [vmem:[#allocation13 + $0x30] sm:$0xff] %v2580_v0  ;;  %v1841_v26 = vpop.f32.mrb[52].mxu1 }
 0x2d8   :  { %v1843_v61 = vpop.f32.mrb[53].mxu1  ;;  %3135 = vmatprep.mubr.f32.mxu0 %v1841_v26 }
 0x2d9   :  { %v3056_v27 = vpop.f32.mrb[8].mxu0 }
 0x2da   :  { %v3338_v28 = vadd.f32 %v3056_v27, %v3934_v46  ;;  %v2231_v29 = vpop.f32.mrb[9].mxu0 }
 0x2db   :  { %v3339_v30 = vadd.f32 %v3934_v46, %v2231_v29  ;;  %v1846_v31 = vpop.f32.mrb[54].mxu1 }
 0x2dc   :  { %v2583_v32 = vmax.f32 %v3338_v28, 0.0  ;;  %v1848_v3 = vpop.f32.mrb[55].mxu1  ;;  %3136 = vmatmul.mubr.f32.gmra.mrb[62].mxu0 %v1846_v31 }
 0x2dd   :  { %v2582_v33 = vmax.f32 %v3339_v30, 0.0 }
 0x2de   :  { %2647 = vst [vmem:[#allocation13 + $0x48] sm:$0xff] %v2583_v32 }
 0x2df   :  { %2646 = vst [vmem:[#allocation13 + $0x40] sm:$0xff] %v2582_v33 }
 0x2e1   :  { %v3059_v34 = vpop.f32.mrb[10].mxu0 }
 0x2e2   :  { %v3340_v35 = vadd.f32 %v3059_v34, %v3934_v46  ;;  %v2241_v36 = vpop.f32.mrb[11].mxu0 }
 0x2e3   :  { %v3341_v37 = vadd.f32 %v3934_v46, %v2241_v36 }
 0x2e4   :  { %v2585_v38 = vmax.f32 %v3340_v35, 0.0 }
 0x2e5   :  { %v2584_v4 = vmax.f32 %v3341_v37, 0.0 }
 0x2e6   :  { %2649 = vst [vmem:[#allocation13 + $0x58] sm:$0xff] %v2585_v38 }
 0x2e7   :  { %2648 = vst [vmem:[#allocation13 + $0x50] sm:$0xff] %v2584_v4 }
 0x2e9   :  { %v3062_v39 = vpop.f32.mrb[12].mxu0 }
 0x2ea   :  { %v3342_v40 = vadd.f32 %v3062_v39, %v3934_v46  ;;  %v2251_v41 = vpop.f32.mrb[13].mxu0 }
 0x2eb   :  { %v3343_v42 = vadd.f32 %v3934_v46, %v2251_v41 }
 0x2ec   :  { %v2587_v43 = vmax.f32 %v3342_v40, 0.0 }
 0x2ed   :  { %v2586_v44 = vmax.f32 %v3343_v42, 0.0 }
 0x2ee   :  { %2651 = vst [vmem:[#allocation13 + $0x68] sm:$0xff] %v2587_v43 }
 0x2ef   :  { %2650 = vst [vmem:[#allocation13 + $0x60] sm:$0xff] %v2586_v44 }
 0x2f1   :  { %v3065_v7 = vpop.f32.mrb[14].mxu0 }
 0x2f2   :  { %v3344_v45 = vadd.f32 %v3065_v7, %v3934_v46  ;;  %v2261_v47 = vpop.f32.mrb[15].mxu0 }
 0x2f3   :  { %v3345_v48 = vadd.f32 %v3934_v46, %v2261_v47 }
 0x2f4   :  { %v2589_v49 = vmax.f32 %v3344_v45, 0.0 }
 0x2f5   :  { %v2588_v50 = vmax.f32 %v3345_v48, 0.0 }
 0x2f6   :  { %2653 = vst [vmem:[#allocation13 + $0x78] sm:$0xff] %v2589_v49 }
 0x2f7   :  { %2652 = vst [vmem:[#allocation13 + $0x70] sm:$0xff] %v2588_v50 }
 0x2f9   :  { %v3068_v17 = vpop.f32.mrb[16].mxu0 }
 0x2fa   :  { %v3346_v51 = vadd.f32 %v3068_v17, %v3934_v46  ;;  %v2271_v52 = vpop.f32.mrb[17].mxu0 }
 0x2fb   :  { %v3347_v54 = vadd.f32 %v3934_v46, %v2271_v52 }
 0x2fc   :  { %v2591_v55 = vmax.f32 %v3346_v51, 0.0 }
 0x2fd   :  { %v2590_v57 = vmax.f32 %v3347_v54, 0.0 }
 0x2fe   :  { %2655 = vst [vmem:[#allocation13 + $0x88] sm:$0xff] %v2591_v55 }
 0x2ff   :  { %2654 = vst [vmem:[#allocation13 + $0x80] sm:$0xff] %v2590_v57 }
 0x301   :  { %v3071_v58 = vpop.f32.mrb[18].mxu0 }
 0x302   :  { %v3348_v59 = vadd.f32 %v3071_v58, %v3934_v46  ;;  %v2281_v23 = vpop.f32.mrb[19].mxu0 }
 0x303   :  { %v3349_v60 = vadd.f32 %v3934_v46, %v2281_v23 }
 0x304   :  { %v2593_v62 = vmax.f32 %v3348_v59, 0.0 }
 0x305   :  { %v2592_v63 = vmax.f32 %v3349_v60, 0.0 }
 0x306   :  { %2657 = vst [vmem:[#allocation13 + $0x98] sm:$0xff] %v2593_v62 }
 0x307   :  { %2656 = vst [vmem:[#allocation13 + $0x90] sm:$0xff] %v2592_v63 }
 0x309   :  { %v3074_v1 = vpop.f32.mrb[20].mxu0 }
 0x30a   :  { %v3350_v2 = vadd.f32 %v3074_v1, %v3934_v46  ;;  %v2291_v53 = vpop.f32.mrb[21].mxu0 }
 0x30b   :  { %v3351_v5 = vadd.f32 %v3934_v46, %v2291_v53 }
 0x30c   :  { %v2595_v6 = vmax.f32 %v3350_v2, 0.0 }
 0x30d   :  { %v2594_v8 = vmax.f32 %v3351_v5, 0.0 }
 0x30e   :  { %2659 = vst [vmem:[#allocation13 + $0xa8] sm:$0xff] %v2595_v6 }
 0x30f   :  { %2658 = vst [vmem:[#allocation13 + $0xa0] sm:$0xff] %v2594_v8 }
 0x311   :  { %v3077_v9 = vpop.f32.mrb[22].mxu0 }
 0x312   :  { %v3352_v10 = vadd.f32 %v3077_v9, %v3934_v46  ;;  %v2301_v11 = vpop.f32.mrb[23].mxu0 }
 0x313   :  { %v3353_v12 = vadd.f32 %v3934_v46, %v2301_v11 }
 0x314   :  { %v2597_v13 = vmax.f32 %v3352_v10, 0.0 }
 0x315   :  { %v2596_v14 = vmax.f32 %v3353_v12, 0.0 }
 0x316   :  { %2661 = vst [vmem:[#allocation13 + $0xb8] sm:$0xff] %v2597_v13 }
 0x317   :  { %2660 = vst [vmem:[#allocation13 + $0xb0] sm:$0xff] %v2596_v14 }
 0x319   :  { %v3080_v15 = vpop.f32.mrb[24].mxu0 }
 0x31a   :  { %v3354_v16 = vadd.f32 %v3080_v15, %v3934_v46  ;;  %v2311_v18 = vpop.f32.mrb[25].mxu0 }
 0x31b   :  { %v3355_v19 = vadd.f32 %v3934_v46, %v2311_v18 }
 0x31c   :  { %v2599_v56 = vmax.f32 %v3354_v16, 0.0 }
 0x31d   :  { %v2598_v20 = vmax.f32 %v3355_v19, 0.0 }
 0x31e   :  { %2663 = vst [vmem:[#allocation13 + $0xc8] sm:$0xff] %v2599_v56 }
 0x31f   :  { %2662 = vst [vmem:[#allocation13 + $0xc0] sm:$0xff] %v2598_v20 }
 0x321   :  { %v3083_v21 = vpop.f32.mrb[26].mxu0 }
 0x322   :  { %v3356_v22 = vadd.f32 %v3083_v21, %v3934_v46  ;;  %v2321_v24 = vpop.f32.mrb[27].mxu0 }
 0x323   :  { %v3357_v25 = vadd.f32 %v3934_v46, %v2321_v24 }
 0x324   :  { %v2601_v0 = vmax.f32 %v3356_v22, 0.0 }
 0x325   :  { %v2600_v26 = vmax.f32 %v3357_v25, 0.0 }
 0x326   :  { %2665 = vst [vmem:[#allocation13 + $0xd8] sm:$0xff] %v2601_v0 }
 0x327   :  { %2664 = vst [vmem:[#allocation13 + $0xd0] sm:$0xff] %v2600_v26 }
 0x329   :  { %v3086_v61 = vpop.f32.mrb[28].mxu0 }
 0x32a   :  { %v3358_v27 = vadd.f32 %v3086_v61, %v3934_v46  ;;  %v2331_v28 = vpop.f32.mrb[29].mxu0 }
 0x32b   :  { %v3359_v29 = vadd.f32 %v3934_v46, %v2331_v28 }
 0x32c   :  { %v2603_v30 = vmax.f32 %v3358_v27, 0.0 }
 0x32d   :  { %v2602_v31 = vmax.f32 %v3359_v29, 0.0 }
 0x32e   :  { %2667 = vst [vmem:[#allocation13 + $0xe8] sm:$0xff] %v2603_v30 }
 0x32f   :  { %2666 = vst [vmem:[#allocation13 + $0xe0] sm:$0xff] %v2602_v31 }
 0x331   :  { %v3089_v32 = vpop.f32.mrb[30].mxu0 }
 0x332   :  { %v3360_v3 = vadd.f32 %v3089_v32, %v3934_v46  ;;  %v2341_v33 = vpop.f32.mrb[31].mxu0 }
 0x333   :  { %v3361_v34 = vadd.f32 %v3934_v46, %v2341_v33 }
 0x334   :  { %v2605_v35 = vmax.f32 %v3360_v3, 0.0 }
 0x335   :  { %v2604_v36 = vmax.f32 %v3361_v34, 0.0 }
 0x336   :  { %2669 = vst [vmem:[#allocation13 + $0xf8] sm:$0xff] %v2605_v35 }
 0x337   :  { %2668 = vst [vmem:[#allocation13 + $0xf0] sm:$0xff] %v2604_v36 }
 0x339   :  { %v3092_v37 = vpop.f32.mrb[32].mxu0 }
 0x33a   :  { %v3362_v38 = vadd.f32 %v3092_v37, %v3934_v46  ;;  %v2351_v4 = vpop.f32.mrb[33].mxu0 }
 0x33b   :  { %v3363_v39 = vadd.f32 %v3934_v46, %v2351_v4 }
 0x33c   :  { %v2607_v40 = vmax.f32 %v3362_v38, 0.0 }
 0x33d   :  { %v2606_v41 = vmax.f32 %v3363_v39, 0.0 }
 0x33e   :  { %2671 = vst [vmem:[#allocation13 + $0x108] sm:$0xff] %v2607_v40 }
 0x33f   :  { %2670 = vst [vmem:[#allocation13 + $0x100] sm:$0xff] %v2606_v41 }
 0x341   :  { %v3095_v42 = vpop.f32.mrb[34].mxu0 }
 0x342   :  { %v3364_v43 = vadd.f32 %v3095_v42, %v3934_v46  ;;  %v2361_v44 = vpop.f32.mrb[35].mxu0 }
 0x343   :  { %v3365_v7 = vadd.f32 %v3934_v46, %v2361_v44 }
 0x344   :  { %v2609_v45 = vmax.f32 %v3364_v43, 0.0 }
 0x345   :  { %v2608_v47 = vmax.f32 %v3365_v7, 0.0 }
 0x346   :  { %2673 = vst [vmem:[#allocation13 + $0x118] sm:$0xff] %v2609_v45 }
 0x347   :  { %2672 = vst [vmem:[#allocation13 + $0x110] sm:$0xff] %v2608_v47  ;;  %v3098_v48 = vpop.f32.mrb[36].mxu0 }
 0x348   :  { %v3366_v49 = vadd.f32 %v3098_v48, %v3934_v46  ;;  %v2371_v50 = vpop.f32.mrb[37].mxu0 }
 0x349   :  { %v3367_v17 = vadd.f32 %v3934_v46, %v2371_v50 }
 0x34a   :  { %v2611_v51 = vmax.f32 %v3366_v49, 0.0 }
 0x34b   :  { %v2610_v52 = vmax.f32 %v3367_v17, 0.0 }
 0x34c   :  { %2675 = vst [vmem:[#allocation13 + $0x128] sm:$0xff] %v2611_v51 }
 0x34d   :  { %2674 = vst [vmem:[#allocation13 + $0x120] sm:$0xff] %v2610_v52 }
 0x34f   :  { %v3101_v54 = vpop.f32.mrb[38].mxu0 }
 0x350   :  { %v3368_v55 = vadd.f32 %v3101_v54, %v3934_v46  ;;  %v2381_v57 = vpop.f32.mrb[39].mxu0 }
 0x351   :  { %v3369_v58 = vadd.f32 %v3934_v46, %v2381_v57 }
 0x352   :  { %v2613_v59 = vmax.f32 %v3368_v55, 0.0 }
 0x353   :  { %v2612_v23 = vmax.f32 %v3369_v58, 0.0 }
 0x354   :  { %2677 = vst [vmem:[#allocation13 + $0x138] sm:$0xff] %v2613_v59 }
 0x355   :  { %2676 = vst [vmem:[#allocation13 + $0x130] sm:$0xff] %v2612_v23 }
 0x357   :  { %v3104_v60 = vpop.f32.mrb[40].mxu0 }
 0x358   :  { %v3370_v62 = vadd.f32 %v3104_v60, %v3934_v46  ;;  %v2391_v63 = vpop.f32.mrb[41].mxu0 }
 0x359   :  { %v3371_v1 = vadd.f32 %v3934_v46, %v2391_v63 }
 0x35a   :  { %v2615_v2 = vmax.f32 %v3370_v62, 0.0 }
 0x35b   :  { %v2614_v53 = vmax.f32 %v3371_v1, 0.0 }
 0x35c   :  { %2679 = vst [vmem:[#allocation13 + $0x148] sm:$0xff] %v2615_v2 }
 0x35d   :  { %2678 = vst [vmem:[#allocation13 + $0x140] sm:$0xff] %v2614_v53 }
 0x35f   :  { %v3107_v5 = vpop.f32.mrb[42].mxu0 }
 0x360   :  { %v3372_v6 = vadd.f32 %v3107_v5, %v3934_v46  ;;  %v2401_v8 = vpop.f32.mrb[43].mxu0 }
 0x361   :  { %v3373_v9 = vadd.f32 %v3934_v46, %v2401_v8 }
 0x362   :  { %v2617_v10 = vmax.f32 %v3372_v6, 0.0 }
 0x363   :  { %v2616_v11 = vmax.f32 %v3373_v9, 0.0 }
 0x364   :  { %2681 = vst [vmem:[#allocation13 + $0x158] sm:$0xff] %v2617_v10 }
 0x365   :  { %2680 = vst [vmem:[#allocation13 + $0x150] sm:$0xff] %v2616_v11 }
 0x367   :  { %v3110_v12 = vpop.f32.mrb[44].mxu0 }
 0x368   :  { %v3374_v13 = vadd.f32 %v3110_v12, %v3934_v46  ;;  %v2411_v14 = vpop.f32.mrb[45].mxu0 }
 0x369   :  { %v3375_v15 = vadd.f32 %v3934_v46, %v2411_v14 }
 0x36a   :  { %v2619_v16 = vmax.f32 %v3374_v13, 0.0 }
 0x36b   :  { %v2618_v18 = vmax.f32 %v3375_v15, 0.0 }
 0x36c   :  { %2683 = vst [vmem:[#allocation13 + $0x168] sm:$0xff] %v2619_v16 }
 0x36d   :  { %2682 = vst [vmem:[#allocation13 + $0x160] sm:$0xff] %v2618_v18 }
 0x36f   :  { %v3113_v19 = vpop.f32.mrb[46].mxu0 }
 0x370   :  { %v3376_v56 = vadd.f32 %v3113_v19, %v3934_v46  ;;  %v2421_v20 = vpop.f32.mrb[47].mxu0 }
 0x371   :  { %v3377_v21 = vadd.f32 %v3934_v46, %v2421_v20 }
 0x372   :  { %v2621_v22 = vmax.f32 %v3376_v56, 0.0 }
 0x373   :  { %v2620_v24 = vmax.f32 %v3377_v21, 0.0 }
 0x374   :  { %2685 = vst [vmem:[#allocation13 + $0x178] sm:$0xff] %v2621_v22 }
 0x375   :  { %2684 = vst [vmem:[#allocation13 + $0x170] sm:$0xff] %v2620_v24 }
 0x377   :  { %v3116_v25 = vpop.f32.mrb[48].mxu0 }
 0x378   :  { %v3378_v0 = vadd.f32 %v3116_v25, %v3934_v46  ;;  %v2431_v26 = vpop.f32.mrb[49].mxu0 }
 0x379   :  { %v3379_v61 = vadd.f32 %v3934_v46, %v2431_v26 }
 0x37a   :  { %v2623_v27 = vmax.f32 %v3378_v0, 0.0 }
 0x37b   :  { %v2622_v28 = vmax.f32 %v3379_v61, 0.0 }
 0x37c   :  { %2687 = vst [vmem:[#allocation13 + $0x188] sm:$0xff] %v2623_v27 }
 0x37d   :  { %2686 = vst [vmem:[#allocation13 + $0x180] sm:$0xff] %v2622_v28 }
 0x37f   :  { %v3119_v29 = vpop.f32.mrb[50].mxu0 }
 0x380   :  { %v3380_v30 = vadd.f32 %v3119_v29, %v3934_v46  ;;  %v2441_v31 = vpop.f32.mrb[51].mxu0 }
 0x381   :  { %v3381_v32 = vadd.f32 %v3934_v46, %v2441_v31 }
 0x382   :  { %v2625_v3 = vmax.f32 %v3380_v30, 0.0 }
 0x383   :  { %v2624_v33 = vmax.f32 %v3381_v32, 0.0 }
 0x384   :  { %2689 = vst [vmem:[#allocation13 + $0x198] sm:$0xff] %v2625_v3 }
 0x385   :  { %2688 = vst [vmem:[#allocation13 + $0x190] sm:$0xff] %v2624_v33 }
 0x387   :  { %v3122_v34 = vpop.f32.mrb[52].mxu0 }
 0x388   :  { %v3382_v35 = vadd.f32 %v3122_v34, %v3934_v46  ;;  %v2451_v36 = vpop.f32.mrb[53].mxu0 }
 0x389   :  { %v3383_v37 = vadd.f32 %v3934_v46, %v2451_v36 }
 0x38a   :  { %v2627_v38 = vmax.f32 %v3382_v35, 0.0 }
 0x38b   :  { %v2626_v4 = vmax.f32 %v3383_v37, 0.0 }
 0x38c   :  { %2691 = vst [vmem:[#allocation13 + $0x1a8] sm:$0xff] %v2627_v38 }
 0x38d   :  { %2690 = vst [vmem:[#allocation13 + $0x1a0] sm:$0xff] %v2626_v4 }
 0x38f   :  { %v3125_v39 = vpop.f32.mrb[54].mxu0 }
 0x390   :  { %v3384_v40 = vadd.f32 %v3125_v39, %v3934_v46  ;;  %v2461_v41 = vpop.f32.mrb[55].mxu0 }
 0x391   :  { %v3385_v42 = vadd.f32 %v3934_v46, %v2461_v41 }
 0x392   :  { %v2629_v43 = vmax.f32 %v3384_v40, 0.0 }
 0x393   :  { %v2628_v44 = vmax.f32 %v3385_v42, 0.0 }
 0x394   :  { %2693 = vst [vmem:[#allocation13 + $0x1b8] sm:$0xff] %v2629_v43 }
 0x395   :  { %2692 = vst [vmem:[#allocation13 + $0x1b0] sm:$0xff] %v2628_v44 }
 0x397   :  { %v3128_v7 = vpop.f32.mrb[56].mxu0 }
 0x398   :  { %v3386_v45 = vadd.f32 %v3128_v7, %v3934_v46  ;;  %v2471_v47 = vpop.f32.mrb[57].mxu0 }
 0x399   :  { %v3387_v48 = vadd.f32 %v3934_v46, %v2471_v47 }
 0x39a   :  { %v2631_v49 = vmax.f32 %v3386_v45, 0.0 }
 0x39b   :  { %v2630_v50 = vmax.f32 %v3387_v48, 0.0 }
 0x39c   :  { %2695 = vst [vmem:[#allocation13 + $0x1c8] sm:$0xff] %v2631_v49 }
 0x39d   :  { %2694 = vst [vmem:[#allocation13 + $0x1c0] sm:$0xff] %v2630_v50 }
 0x39f   :  { %v3131_v17 = vpop.f32.mrb[58].mxu0 }
 0x3a0   :  { %v3388_v51 = vadd.f32 %v3131_v17, %v3934_v46  ;;  %v2481_v52 = vpop.f32.mrb[59].mxu0 }
 0x3a1   :  { %v3389_v54 = vadd.f32 %v3934_v46, %v2481_v52 }
 0x3a2   :  { %v2633_v55 = vmax.f32 %v3388_v51, 0.0 }
 0x3a3   :  { %v2632_v57 = vmax.f32 %v3389_v54, 0.0 }
 0x3a4   :  { %2697 = vst [vmem:[#allocation13 + $0x1d8] sm:$0xff] %v2633_v55 }
 0x3a5   :  { %2696 = vst [vmem:[#allocation13 + $0x1d0] sm:$0xff] %v2632_v57 }
 0x3a7   :  { %v3134_v58 = vpop.f32.mrb[60].mxu0 }
 0x3a8   :  { %v3390_v59 = vadd.f32 %v3134_v58, %v3934_v46  ;;  %v2491_v23 = vpop.f32.mrb[61].mxu0 }
 0x3a9   :  { %v3391_v60 = vadd.f32 %v3934_v46, %v2491_v23 }
 0x3aa   :  { %v2635_v62 = vmax.f32 %v3390_v59, 0.0 }
 0x3ab   :  { %v2634_v63 = vmax.f32 %v3391_v60, 0.0 }
 0x3ac   :  { %2699 = vst [vmem:[#allocation13 + $0x1e8] sm:$0xff] %v2635_v62 }
 0x3ad   :  { %2698 = vst [vmem:[#allocation13 + $0x1e0] sm:$0xff] %v2634_v63 }
 0x3af   :  { %v3137_v1 = vpop.f32.mrb[62].mxu0 }
 0x3b0   :  { %v3392_v2 = vadd.f32 %v3137_v1, %v3934_v46  ;;  %v2501_v53 = vpop.f32.mrb[63].mxu0 }
 0x3b1   :  { %v3393_v5 = vadd.f32 %v3934_v46, %v2501_v53 }
 0x3b2   :  { %v2637_v6 = vmax.f32 %v3392_v2, 0.0 }
 0x3b3   :  { %v2636_v8 = vmax.f32 %v3393_v5, 0.0 }
 0x3b4   :  { %2701 = vst [vmem:[#allocation13 + $0x1f8] sm:$0xff] %v2637_v6 }
 0x3b5   :  { %2700 = vst [vmem:[#allocation13 + $0x1f0] sm:$0xff] %v2636_v8 }
 0x3b6   :  { %3682 = shalt.err (!%p3679_p2)
}
 0x3b7   :  { %s3683_s17 = scalar_lea.hbm %s4021_s6, 8192 }
 0x3b8   :  { %p3684_p3 = scmp.ne.s32.totalorder %s4021_s6, %s3683_s17  ;;  %p3687_p4 = scmp.lt.u32.totalorder %s3683_s17, %s4021_s6 }
 0x3ba   :  { %p3689_p5 = pnand %p3687_p4, %p3684_p3 }
 0x3bc   :  { %3692 = shalt.err (!%p3689_p5)
}
 0x3bd   :  { %2713 = dma.vmem_to_hbm [thread:$0]  %s2708_s12, 8192, %s4021_s6, [#allocation6], %s3702_s7, %s3702_s7, %s3703_s8  }
 0x3be   :  { %3699 = dma.done.wait [#allocation6], 8192  }
 0x3bf   :  { %3700 = vsyncadd [#allocation6], 4294959104 }
 0x3c0   :  { %2717 = vsyncpa [#allocation5], 1 }
 0x3c1   :  { %2718 = vsyncpa [#allocation8], 1 }
 0x3c2   :  { %2719 = vsyncpa [#allocation11], 1 }
 0x3c3   :  { %2720 = vsyncpa [#allocation6], 1 }

</bundles_post_ra>
